<compile_context>
chip_gen: v7x
topology: tpu7x:2x2x1
jax: 0.10.0
libtpu: 0.0.40
codegen_flags: <defaults>
</compile_context>

<pallas_src>
import numpy as np
import jax
import jax.numpy as jnp
from jax.experimental import pallas as pl
from jax.experimental.pallas import tpu as pltpu

HIDDEN = 32
NUM_ACTIONS = 4
BATCH = 2
IMG_SIZE = 16          # state_dim of the image state (H == W)
IMG_CH = 3             # input_channel hard-coded in Backbones
VEC_DIM = 8            # vector state dimension
C1 = 16                # output_channel // 2
C2 = 32                # output_channel
AFTER_CONV = C2 * (IMG_SIZE // 4) ** 2   # 32 * 4 * 4 = 512
BN_EPS = 1e-5
INIT_W = 0.003

# params that are passed to the kernel (after the 3 runtime inputs), in call order
_PARAM_ORDER = (
    "selab", "w1cat", "b1c", "g1", "be1",
    "w2cat", "b2c", "g2", "be2",
    "wtw", "m32", "amat", "rmat", "bt",
    "wv", "bv", "w1", "b1q", "w2q", "b2q", "w3q", "b3q", "w4q", "b4q",
)


# ----------------------------- fused Pallas kernel -----------------------------

def _fused_kernel(*refs):
    (p1_ref, sv_ref, act_ref,
     selab_ref, w1cat_ref, b1c_ref, g1_ref, be1_ref,
     w2cat_ref, b2c_ref, g2_ref, be2_ref,
     wtw_ref, m32_ref, amat_ref, rmat_ref, bt_ref,
     wv_ref, bv_ref, w1_ref, b1q_ref, w2q_ref, b2q_ref,
     w3q_ref, b3q_ref, w4q_ref, b4q_ref, o_ref) = refs

    f32 = jnp.float32
    bf16 = jnp.bfloat16
    nb = sv_ref.shape[0]          # batch
    r2 = nb * 16                  # rows of the stage-2 / BN2 activation matrix

    # ---- CNN stage 1: Conv3x3(pad1) -> MaxPool2x2 -> ReLU -> BatchNorm (training batch stats)
    # p1: (B*8*8, 16*3) 4x4/stride-2 im2col patches; w1cat: (48, 4*16) parity-concatenated weights.
    c1 = jnp.dot(p1_ref[...].astype(bf16), w1cat_ref[...], preferred_element_type=f32)
    pool1 = jnp.maximum(jnp.maximum(c1[:, 0:16], c1[:, 16:32]),
                        jnp.maximum(c1[:, 32:48], c1[:, 48:64]))          # 2x2 max-pool (4 parities)
    y = jnp.maximum(pool1 + b1c_ref[...], 0.0)                            # conv bias + ReLU
    mu1 = jnp.mean(y, axis=0, keepdims=True)                              # stats over (N,H,W)
    var1 = jnp.mean(jnp.square(y - mu1), axis=0, keepdims=True)
    y1 = (y - mu1) * jax.lax.rsqrt(var1 + BN_EPS) * g1_ref[...] + be1_ref[...]   # (B*64, 16)

    # ---- CNN stage 2: in-VMEM patch gather (constant 0/1 selection matmul) + K-blocked conv
    # g[(phpw, b, ohow), c] = zero-padded y1 value at patch position (ph,pw) of output (oh,ow).
    g = jnp.dot(selab_ref[...], y1, preferred_element_type=f32)           # (16*B*16, 16)
    gb = g.astype(bf16)
    w2c = w2cat_ref[...]                                                  # (256, 4*32)
    acc = jnp.dot(gb[0:r2, :], w2c[0:16, :], preferred_element_type=f32)
    for k in range(1, 16):
        acc = acc + jnp.dot(gb[k * r2:(k + 1) * r2, :],
                            w2c[k * 16:(k + 1) * 16, :],
                            preferred_element_type=f32)                   # (B*16, 4*32)
    pool2 = jnp.maximum(jnp.maximum(acc[:, 0:32], acc[:, 32:64]),
                        jnp.maximum(acc[:, 64:96], acc[:, 96:128]))
    z = jnp.maximum(pool2 + b2c_ref[...], 0.0)
    mu2 = jnp.mean(z, axis=0, keepdims=True)
    var2 = jnp.mean(jnp.square(z - mu2), axis=0, keepdims=True)
    zn = (z - mu2) * jax.lax.rsqrt(var2 + BN_EPS) * g2_ref[...] + be2_ref[...]   # (B*16, 32)

    # ---- cnn_tail Linear(512,32); torch's NCHW z.view(-1,512) is folded into wtw/m32/amat/rmat:
    # f_img[b,j] = sum_{o,c} zn[b*16+o, c] * wt[c*16+o, j]
    t = jnp.dot(zn.astype(bf16), wtw_ref[...], preferred_element_type=f32)        # (B*16, 512)
    s = jnp.dot(amat_ref[...], t * m32_ref[...], preferred_element_type=f32)      # (B, 512)
    f_img = jnp.dot(s, rmat_ref[...], preferred_element_type=f32) + bt_ref[...]   # (B, 32)

    # ---- vector-state MLP + 4-layer Q head (linear1 over concat as a split matmul)
    f_vec = jnp.maximum(
        jnp.dot(sv_ref[...].astype(bf16), wv_ref[...], preferred_element_type=f32)
        + bv_ref[...], 0.0)
    w1m = w1_ref[...]                                                     # (68, 32)
    h = (jnp.dot(f_vec.astype(bf16), w1m[0:HIDDEN, :], preferred_element_type=f32)
         + jnp.dot(f_img.astype(bf16), w1m[HIDDEN:2 * HIDDEN, :], preferred_element_type=f32)
         + jnp.dot(act_ref[...].astype(bf16), w1m[2 * HIDDEN:, :], preferred_element_type=f32)
         + b1q_ref[...])
    h = jnp.maximum(h, 0.0)
    h = jnp.maximum(jnp.dot(h.astype(bf16), w2q_ref[...], preferred_element_type=f32)
                    + b2q_ref[...], 0.0)
    h = jnp.maximum(jnp.dot(h.astype(bf16), w3q_ref[...], preferred_element_type=f32)
                    + b3q_ref[...], 0.0)
    o_ref[...] = jnp.dot(h.astype(bf16), w4q_ref[...], preferred_element_type=f32) + b4q_ref[...]


# ----------------------------- init-time weight / constant preparation -----------------------------

def _scatter_conv_weight_cat(w_oihw):
    """OIHW (Cout,Cin,3,3) -> (16*Cin, 4*Cout): im2col weights for fused conv3x3(pad1)+maxpool2x2.
    Patch feature index = (ph*4+pw)*Cin + ci; the 4 pool-window parities are concatenated on N."""
    w = np.asarray(w_oihw, dtype=np.float32)
    cout, cin = w.shape[0], w.shape[1]
    m = np.zeros((16 * cin, 4 * cout), dtype=np.float32)
    for ty in range(2):
        for tx in range(2):
            t = ty * 2 + tx
            for ky in range(3):
                for kx in range(3):
                    ph, pw = ty + ky, tx + kx
                    r0 = (ph * 4 + pw) * cin
                    m[r0:r0 + cin, t * cout:(t + 1) * cout] = w[:, :, ky, kx].T
    return m


def _build_selab(nb):
    """(16*nb*16, nb*64) 0/1 gather: row (phpw, b, ohow) selects the y1 row (b, 2oh-1+ph, 2ow-1+pw);
    all-zero row implements the conv's zero padding."""
    sel = np.zeros((16 * nb * 16, nb * 64), dtype=np.float32)
    for ph in range(4):
        for pw in range(4):
            k = ph * 4 + pw
            for b in range(nb):
                for oh in range(4):
                    for ow in range(4):
                        h, w = 2 * oh - 1 + ph, 2 * ow - 1 + pw
                        if 0 <= h < 8 and 0 <= w < 8:
                            sel[k * nb * 16 + b * 16 + oh * 4 + ow, b * 64 + h * 8 + w] = 1.0
    return sel


def _build_tail_mask(nb):
    m = np.zeros((nb * 16, 16 * HIDDEN), dtype=np.float32)
    for b in range(nb):
        for o in range(16):
            m[b * 16 + o, o * HIDDEN:(o + 1) * HIDDEN] = 1.0
    return m


def _build_batch_sum(nb):
    return np.kron(np.eye(nb, dtype=np.float32), np.ones((1, 16), dtype=np.float32))


def prepare_kernel_params(params):
    """Hoisted, one-time layout transforms (kept OUT of the jitted forward)."""
    bf16 = jnp.bfloat16
    return {
        "selab": jnp.asarray(_build_selab(BATCH)),
        "w1cat": jnp.asarray(_scatter_conv_weight_cat(params["conv1_w"])).astype(bf16),
        "b1c": params["conv1_b"], "g1": params["bn1_g"], "be1": params["bn1_b"],
        "w2cat": jnp.asarray(_scatter_conv_weight_cat(params["conv2_w"])).astype(bf16),
        "b2c": params["conv2_b"], "g2": params["bn2_g"], "be2": params["bn2_b"],
        # wt rows are the NCHW-flatten features (c*16 + ohow); reshape to (C2, 16*HIDDEN) so that
        # wtw[c, ohow*HIDDEN + j] == wt[c*16+ohow, j]
        "wtw": jnp.reshape(params["wt"], (C2, 16 * HIDDEN)).astype(bf16),
        "m32": jnp.asarray(_build_tail_mask(BATCH)),
        "amat": jnp.asarray(_build_batch_sum(BATCH)),
        "rmat": jnp.asarray(np.tile(np.eye(HIDDEN, dtype=np.float32), (16, 1))),
        "bt": params["bt"],
        "wv": params["wv"].astype(bf16), "bv": params["bv"],
        "w1": params["w1"].astype(bf16), "b1q": params["b1"],
        "w2q": params["w2"].astype(bf16), "b2q": params["b2"],
        "w3q": params["w3"].astype(bf16), "b3q": params["b3"],
        "w4q": params["w4"].astype(bf16), "b4q": params["b4"],
    }


# ----------------------------- wrapper -----------------------------

def _extract_pool_patches(x_nhwc):
    """(B,H,W,C) -> (B*(H//2)*(W//2), 16*C) patches for fused conv3x3(pad1)+maxpool2x2.
    Feature order (ph, pw, c); one pad + 16 strided slices (fused by XLA)."""
    B, H, W, C = x_nhwc.shape
    Ho, Wo = H // 2, W // 2
    xp = jnp.pad(x_nhwc, ((0, 0), (1, 1), (1, 1), (0, 0)))
    slabs = [xp[:, ph:ph + 2 * Ho:2, pw:pw + 2 * Wo:2, :] for ph in range(4) for pw in range(4)]
    p = jnp.stack(slabs, axis=3)                       # (B, Ho, Wo, 16, C)
    return p.reshape(B * Ho * Wo, 16 * C)


def soft_q_forward(kparams, state_vec, state_img_nchw, action):
    x = jnp.transpose(state_img_nchw, (0, 2, 3, 1))    # NCHW -> NHWC
    p1 = _extract_pool_patches(x)                      # (B*64, 48)
    n_in = 3 + len(_PARAM_ORDER)
    return pl.pallas_call(
        _fused_kernel,
        out_shape=jax.ShapeDtypeStruct((state_vec.shape[0], 1), jnp.float32),
        in_specs=[pl.BlockSpec(memory_space=pltpu.MemorySpace.VMEM)] * n_in,
        out_specs=pl.BlockSpec(memory_space=pltpu.MemorySpace.VMEM),
    )(p1, state_vec, action, *[kparams[k] for k in _PARAM_ORDER])


# ----------------------------- parameter init (PyTorch-style) -----------------------------

def init_params(key):
    ks = jax.random.split(key, 16)

    def unif(k, shape, bound):
        return jax.random.uniform(k, shape, jnp.float32, -bound, bound)

    def linear(kw, kb, fan_in, fan_out, bound=None):
        b = 1.0 / (fan_in ** 0.5) if bound is None else bound
        return unif(kw, (fan_in, fan_out), b), unif(kb, (1, fan_out), b)

    p = {}
    # Backbones: state 0 -> Linear(8,32)+ReLU ; state 1 -> CNN + cnn_tail Linear(512,32)
    p['wv'], p['bv'] = linear(ks[0], ks[1], VEC_DIM, HIDDEN)
    cb1 = 1.0 / (IMG_CH * 9) ** 0.5
    cb2 = 1.0 / (C1 * 9) ** 0.5
    p['conv1_w'] = unif(ks[2], (C1, IMG_CH, 3, 3), cb1)   # PyTorch OIHW
    p['conv1_b'] = unif(ks[3], (1, C1), cb1)
    p['conv2_w'] = unif(ks[4], (C2, C1, 3, 3), cb2)
    p['conv2_b'] = unif(ks[5], (1, C2), cb2)
    p['bn1_g'] = jnp.ones((1, C1), jnp.float32)
    p['bn1_b'] = jnp.zeros((1, C1), jnp.float32)
    p['bn2_g'] = jnp.ones((1, C2), jnp.float32)
    p['bn2_b'] = jnp.zeros((1, C2), jnp.float32)
    p['wt'], p['bt'] = linear(ks[6], ks[7], AFTER_CONV, HIDDEN)
    # Q head
    p['w1'], p['b1'] = linear(ks[8], ks[9], 2 * HIDDEN + NUM_ACTIONS, HIDDEN)
    p['w2'], p['b2'] = linear(ks[10], ks[11], HIDDEN, HIDDEN)
    p['w3'], p['b3'] = linear(ks[12], ks[13], HIDDEN, HIDDEN)
    p['w4'], p['b4'] = linear(ks[14], ks[15], HIDDEN, 1, bound=INIT_W)   # init_w=0.003
    return p


# ----------------------------- pure-JAX reference (for verification) -----------------------------

def reference_forward(params, state_vec, state_img_nchw, action):
    hp = jax.lax.Precision.HIGHEST

    def conv(x, w, b):
        y = jax.lax.conv_general_dilated(x, w, (1, 1), ((1, 1), (1, 1)),
                                         dimension_numbers=('NCHW', 'OIHW', 'NCHW'), precision=hp)
        return y + b.reshape(1, -1, 1, 1)

    def maxpool(x):
        return jax.lax.reduce_window(x, -jnp.inf, jax.lax.max, (1, 1, 2, 2), (1, 1, 2, 2), 'VALID')

    def bn(x, g, bta):
        mean = jnp.mean(x, axis=(0, 2, 3), keepdims=True)
        var = jnp.mean(jnp.square(x - mean), axis=(0, 2, 3), keepdims=True)
        return (x - mean) * jax.lax.rsqrt(var + BN_EPS) * g.reshape(1, -1, 1, 1) + bta.reshape(1, -1, 1, 1)

    z = bn(jnp.maximum(maxpool(conv(state_img_nchw, params['conv1_w'], params['conv1_b'])), 0.0),
           params['bn1_g'], params['bn1_b'])
    z = bn(jnp.maximum(maxpool(conv(z, params['conv2_w'], params['conv2_b'])), 0.0),
           params['bn2_g'], params['bn2_b'])
    z = z.reshape(z.shape[0], -1)

    f_img = jnp.dot(z, params['wt'], precision=hp) + params['bt']
    f_vec = jnp.maximum(jnp.dot(state_vec, params['wv'], precision=hp) + params['bv'], 0.0)
    xcat = jnp.concatenate([f_vec, f_img, action], axis=1)
    h = jnp.maximum(jnp.dot(xcat, params['w1'], precision=hp) + params['b1'], 0.0)
    h = jnp.maximum(jnp.dot(h, params['w2'], precision=hp) + params['b2'], 0.0)
    h = jnp.maximum(jnp.dot(h, params['w3'], precision=hp) + params['b3'], 0.0)
    return jnp.dot(h, params['w4'], precision=hp) + params['b4']


if __name__ == "__main__":
    key = jax.random.PRNGKey(0)
    kp_, k1, k2, k3 = jax.random.split(key, 4)
    params = init_params(kp_)
    kparams = prepare_kernel_params(params)   # hoisted weight-layout transforms (outside jit)

    # state_list ~ [vector state (B, 8), image state (B, 3, 16, 16) in torch NCHW]; action (B, 4)
    state_vec = jax.random.normal(k1, (BATCH, VEC_DIM), jnp.float32)
    state_img = jax.random.normal(k2, (BATCH, IMG_CH, IMG_SIZE, IMG_SIZE), jnp.float32)
    action = jax.random.normal(k3, (BATCH, NUM_ACTIONS), jnp.float32)

    fwd = jax.jit(soft_q_forward)
    q = jax.block_until_ready(fwd(kparams, state_vec, state_img, action))
    q_ref = jax.block_until_ready(reference_forward(params, state_vec, state_img, action))

    assert q.shape == (BATCH, 1), q.shape
    # bf16 MXU operands (f32 accumulation) => slightly looser atol than a pure-f32 comparison.
    if not jnp.allclose(q, q_ref, atol=2e-3, rtol=1e-2):
        raise AssertionError(f"kernel/reference mismatch: kernel={q.ravel()} ref={q_ref.ravel()}")
    print("KERNEL_OK")
</pallas_src>

<mosaic_0001>
module attributes {stable_mosaic.version = 11 : i64} {
  func.func @_fused_kernel(%arg0: memref<128x48xf32, #tpu.memory_space<vmem>>, %arg1: memref<2x8xf32, #tpu.memory_space<vmem>>, %arg2: memref<2x4xf32, #tpu.memory_space<vmem>>, %arg3: memref<512x128xf32, #tpu.memory_space<vmem>>, %arg4: memref<48x64xbf16, #tpu.memory_space<vmem>>, %arg5: memref<1x16xf32, #tpu.memory_space<vmem>>, %arg6: memref<1x16xf32, #tpu.memory_space<vmem>>, %arg7: memref<1x16xf32, #tpu.memory_space<vmem>>, %arg8: memref<256x128xbf16, #tpu.memory_space<vmem>>, %arg9: memref<1x32xf32, #tpu.memory_space<vmem>>, %arg10: memref<1x32xf32, #tpu.memory_space<vmem>>, %arg11: memref<1x32xf32, #tpu.memory_space<vmem>>, %arg12: memref<32x512xbf16, #tpu.memory_space<vmem>>, %arg13: memref<32x512xf32, #tpu.memory_space<vmem>>, %arg14: memref<2x32xf32, #tpu.memory_space<vmem>>, %arg15: memref<512x32xf32, #tpu.memory_space<vmem>>, %arg16: memref<1x32xf32, #tpu.memory_space<vmem>>, %arg17: memref<8x32xbf16, #tpu.memory_space<vmem>>, %arg18: memref<1x32xf32, #tpu.memory_space<vmem>>, %arg19: memref<68x32xbf16, #tpu.memory_space<vmem>>, %arg20: memref<1x32xf32, #tpu.memory_space<vmem>>, %arg21: memref<32x32xbf16, #tpu.memory_space<vmem>>, %arg22: memref<1x32xf32, #tpu.memory_space<vmem>>, %arg23: memref<32x32xbf16, #tpu.memory_space<vmem>>, %arg24: memref<1x32xf32, #tpu.memory_space<vmem>>, %arg25: memref<32x1xbf16, #tpu.memory_space<vmem>>, %arg26: memref<1x1xf32, #tpu.memory_space<vmem>>, %arg27: memref<2x1xf32, #tpu.memory_space<vmem>>) attributes {dimension_semantics = [], scalar_prefetch = 0 : i64, scratch_operands = 0 : i64, tpu.core_type = #tpu.core_type<tc>} {
    %c0 = arith.constant 0 : index
    %c0_0 = arith.constant 0 : index
    %0 = vector.load %arg0[%c0, %c0_0] : memref<128x48xf32, #tpu.memory_space<vmem>>, vector<128x48xf32>
    %1 = arith.truncf %0 : vector<128x48xf32> to vector<128x48xbf16>
    %c0_1 = arith.constant 0 : index
    %c0_2 = arith.constant 0 : index
    %2 = vector.load %arg4[%c0_1, %c0_2] : memref<48x64xbf16, #tpu.memory_space<vmem>>, vector<48x64xbf16>
    %cst = arith.constant dense<0.000000e+00> : vector<128x64xf32>
    %3 = tpu.matmul %1, %2, %cst {dimension_numbers = #tpu.dot_dimension_numbers<[1], [0], [0], [1], [0, 0, 1, 1], [], []>} : vector<128x48xbf16>, vector<48x64xbf16>, vector<128x64xf32> -> vector<128x64xf32>
    %4 = vector.extract_strided_slice %3 {offsets = [0, 0], sizes = [128, 16], strides = [1, 1]} : vector<128x64xf32> to vector<128x16xf32>
    %5 = vector.extract_strided_slice %3 {offsets = [0, 16], sizes = [128, 16], strides = [1, 1]} : vector<128x64xf32> to vector<128x16xf32>
    %6 = arith.maximumf %4, %5 : vector<128x16xf32>
    %7 = vector.extract_strided_slice %3 {offsets = [0, 32], sizes = [128, 16], strides = [1, 1]} : vector<128x64xf32> to vector<128x16xf32>
    %8 = vector.extract_strided_slice %3 {offsets = [0, 48], sizes = [128, 16], strides = [1, 1]} : vector<128x64xf32> to vector<128x16xf32>
    %9 = arith.maximumf %7, %8 : vector<128x16xf32>
    %10 = arith.maximumf %6, %9 : vector<128x16xf32>
    %c0_3 = arith.constant 0 : index
    %c0_4 = arith.constant 0 : index
    %11 = vector.load %arg5[%c0_3, %c0_4] : memref<1x16xf32, #tpu.memory_space<vmem>>, vector<1x16xf32>
    %12 = vector.broadcast %11 : vector<1x16xf32> to vector<128x16xf32>
    %13 = arith.addf %10, %12 : vector<128x16xf32>
    %cst_5 = arith.constant 0.000000e+00 : f32
    %14 = vector.broadcast %cst_5 : f32 to vector<128x16xf32>
    %15 = arith.maximumf %13, %14 : vector<128x16xf32>
    %cst_6 = arith.constant dense<0.000000e+00> : vector<16xf32>
    %16 = vector.multi_reduction <add>, %15, %cst_6 [0] : vector<128x16xf32> to vector<16xf32>
    %17 = vector.shape_cast %16 : vector<16xf32> to vector<1x16xf32>
    %cst_7 = arith.constant 1.280000e+02 : f32
    %18 = vector.broadcast %cst_7 : f32 to vector<1x16xf32>
    %19 = arith.divf %17, %18 : vector<1x16xf32>
    %20 = vector.broadcast %19 : vector<1x16xf32> to vector<128x16xf32>
    %21 = arith.subf %15, %20 : vector<128x16xf32>
    %22 = arith.mulf %21, %21 : vector<128x16xf32>
    %cst_8 = arith.constant dense<0.000000e+00> : vector<16xf32>
    %23 = vector.multi_reduction <add>, %22, %cst_8 [0] : vector<128x16xf32> to vector<16xf32>
    %24 = vector.shape_cast %23 : vector<16xf32> to vector<1x16xf32>
    %cst_9 = arith.constant 1.280000e+02 : f32
    %25 = vector.broadcast %cst_9 : f32 to vector<1x16xf32>
    %26 = arith.divf %24, %25 : vector<1x16xf32>
    %27 = vector.broadcast %19 : vector<1x16xf32> to vector<128x16xf32>
    %28 = arith.subf %15, %27 : vector<128x16xf32>
    %cst_10 = arith.constant 9.99999974E-6 : f32
    %29 = vector.broadcast %cst_10 : f32 to vector<1x16xf32>
    %30 = arith.addf %26, %29 : vector<1x16xf32>
    %31 = math.rsqrt %30 : vector<1x16xf32>
    %32 = vector.broadcast %31 : vector<1x16xf32> to vector<128x16xf32>
    %33 = arith.mulf %28, %32 : vector<128x16xf32>
    %c0_11 = arith.constant 0 : index
    %c0_12 = arith.constant 0 : index
    %34 = vector.load %arg6[%c0_11, %c0_12] : memref<1x16xf32, #tpu.memory_space<vmem>>, vector<1x16xf32>
    %35 = vector.broadcast %34 : vector<1x16xf32> to vector<128x16xf32>
    %36 = arith.mulf %33, %35 : vector<128x16xf32>
    %c0_13 = arith.constant 0 : index
    %c0_14 = arith.constant 0 : index
    %37 = vector.load %arg7[%c0_13, %c0_14] : memref<1x16xf32, #tpu.memory_space<vmem>>, vector<1x16xf32>
    %38 = vector.broadcast %37 : vector<1x16xf32> to vector<128x16xf32>
    %39 = arith.addf %36, %38 : vector<128x16xf32>
    %c0_15 = arith.constant 0 : index
    %c0_16 = arith.constant 0 : index
    %40 = vector.load %arg3[%c0_15, %c0_16] : memref<512x128xf32, #tpu.memory_space<vmem>>, vector<512x128xf32>
    %cst_17 = arith.constant dense<0.000000e+00> : vector<512x16xf32>
    %41 = tpu.matmul %40, %39, %cst_17 {dimension_numbers = #tpu.dot_dimension_numbers<[1], [0], [0], [1], [0, 0, 1, 1], [], []>} : vector<512x128xf32>, vector<128x16xf32>, vector<512x16xf32> -> vector<512x16xf32>
    %42 = arith.truncf %41 : vector<512x16xf32> to vector<512x16xbf16>
    %c0_18 = arith.constant 0 : index
    %c0_19 = arith.constant 0 : index
    %43 = vector.load %arg8[%c0_18, %c0_19] : memref<256x128xbf16, #tpu.memory_space<vmem>>, vector<256x128xbf16>
    %44 = vector.extract_strided_slice %42 {offsets = [0, 0], sizes = [32, 16], strides = [1, 1]} : vector<512x16xbf16> to vector<32x16xbf16>
    %45 = vector.extract_strided_slice %43 {offsets = [0, 0], sizes = [16, 128], strides = [1, 1]} : vector<256x128xbf16> to vector<16x128xbf16>
    %cst_20 = arith.constant dense<0.000000e+00> : vector<32x128xf32>
    %46 = tpu.matmul %44, %45, %cst_20 {dimension_numbers = #tpu.dot_dimension_numbers<[1], [0], [0], [1], [0, 0, 1, 1], [], []>} : vector<32x16xbf16>, vector<16x128xbf16>, vector<32x128xf32> -> vector<32x128xf32>
    %47 = vector.extract_strided_slice %42 {offsets = [32, 0], sizes = [32, 16], strides = [1, 1]} : vector<512x16xbf16> to vector<32x16xbf16>
    %48 = vector.extract_strided_slice %43 {offsets = [16, 0], sizes = [16, 128], strides = [1, 1]} : vector<256x128xbf16> to vector<16x128xbf16>
    %cst_21 = arith.constant dense<0.000000e+00> : vector<32x128xf32>
    %49 = tpu.matmul %47, %48, %cst_21 {dimension_numbers = #tpu.dot_dimension_numbers<[1], [0], [0], [1], [0, 0, 1, 1], [], []>} : vector<32x16xbf16>, vector<16x128xbf16>, vector<32x128xf32> -> vector<32x128xf32>
    %50 = arith.addf %46, %49 : vector<32x128xf32>
    %51 = vector.extract_strided_slice %42 {offsets = [64, 0], sizes = [32, 16], strides = [1, 1]} : vector<512x16xbf16> to vector<32x16xbf16>
    %52 = vector.extract_strided_slice %43 {offsets = [32, 0], sizes = [16, 128], strides = [1, 1]} : vector<256x128xbf16> to vector<16x128xbf16>
    %cst_22 = arith.constant dense<0.000000e+00> : vector<32x128xf32>
    %53 = tpu.matmul %51, %52, %cst_22 {dimension_numbers = #tpu.dot_dimension_numbers<[1], [0], [0], [1], [0, 0, 1, 1], [], []>} : vector<32x16xbf16>, vector<16x128xbf16>, vector<32x128xf32> -> vector<32x128xf32>
    %54 = arith.addf %50, %53 : vector<32x128xf32>
    %55 = vector.extract_strided_slice %42 {offsets = [96, 0], sizes = [32, 16], strides = [1, 1]} : vector<512x16xbf16> to vector<32x16xbf16>
    %56 = vector.extract_strided_slice %43 {offsets = [48, 0], sizes = [16, 128], strides = [1, 1]} : vector<256x128xbf16> to vector<16x128xbf16>
    %cst_23 = arith.constant dense<0.000000e+00> : vector<32x128xf32>
    %57 = tpu.matmul %55, %56, %cst_23 {dimension_numbers = #tpu.dot_dimension_numbers<[1], [0], [0], [1], [0, 0, 1, 1], [], []>} : vector<32x16xbf16>, vector<16x128xbf16>, vector<32x128xf32> -> vector<32x128xf32>
    %58 = arith.addf %54, %57 : vector<32x128xf32>
    %59 = vector.extract_strided_slice %42 {offsets = [128, 0], sizes = [32, 16], strides = [1, 1]} : vector<512x16xbf16> to vector<32x16xbf16>
    %60 = vector.extract_strided_slice %43 {offsets = [64, 0], sizes = [16, 128], strides = [1, 1]} : vector<256x128xbf16> to vector<16x128xbf16>
    %cst_24 = arith.constant dense<0.000000e+00> : vector<32x128xf32>
    %61 = tpu.matmul %59, %60, %cst_24 {dimension_numbers = #tpu.dot_dimension_numbers<[1], [0], [0], [1], [0, 0, 1, 1], [], []>} : vector<32x16xbf16>, vector<16x128xbf16>, vector<32x128xf32> -> vector<32x128xf32>
    %62 = arith.addf %58, %61 : vector<32x128xf32>
    %63 = vector.extract_strided_slice %42 {offsets = [160, 0], sizes = [32, 16], strides = [1, 1]} : vector<512x16xbf16> to vector<32x16xbf16>
    %64 = vector.extract_strided_slice %43 {offsets = [80, 0], sizes = [16, 128], strides = [1, 1]} : vector<256x128xbf16> to vector<16x128xbf16>
    %cst_25 = arith.constant dense<0.000000e+00> : vector<32x128xf32>
    %65 = tpu.matmul %63, %64, %cst_25 {dimension_numbers = #tpu.dot_dimension_numbers<[1], [0], [0], [1], [0, 0, 1, 1], [], []>} : vector<32x16xbf16>, vector<16x128xbf16>, vector<32x128xf32> -> vector<32x128xf32>
    %66 = arith.addf %62, %65 : vector<32x128xf32>
    %67 = vector.extract_strided_slice %42 {offsets = [192, 0], sizes = [32, 16], strides = [1, 1]} : vector<512x16xbf16> to vector<32x16xbf16>
    %68 = vector.extract_strided_slice %43 {offsets = [96, 0], sizes = [16, 128], strides = [1, 1]} : vector<256x128xbf16> to vector<16x128xbf16>
    %cst_26 = arith.constant dense<0.000000e+00> : vector<32x128xf32>
    %69 = tpu.matmul %67, %68, %cst_26 {dimension_numbers = #tpu.dot_dimension_numbers<[1], [0], [0], [1], [0, 0, 1, 1], [], []>} : vector<32x16xbf16>, vector<16x128xbf16>, vector<32x128xf32> -> vector<32x128xf32>
    %70 = arith.addf %66, %69 : vector<32x128xf32>
    %71 = vector.extract_strided_slice %42 {offsets = [224, 0], sizes = [32, 16], strides = [1, 1]} : vector<512x16xbf16> to vector<32x16xbf16>
    %72 = vector.extract_strided_slice %43 {offsets = [112, 0], sizes = [16, 128], strides = [1, 1]} : vector<256x128xbf16> to vector<16x128xbf16>
    %cst_27 = arith.constant dense<0.000000e+00> : vector<32x128xf32>
    %73 = tpu.matmul %71, %72, %cst_27 {dimension_numbers = #tpu.dot_dimension_numbers<[1], [0], [0], [1], [0, 0, 1, 1], [], []>} : vector<32x16xbf16>, vector<16x128xbf16>, vector<32x128xf32> -> vector<32x128xf32>
    %74 = arith.addf %70, %73 : vector<32x128xf32>
    %75 = vector.extract_strided_slice %42 {offsets = [256, 0], sizes = [32, 16], strides = [1, 1]} : vector<512x16xbf16> to vector<32x16xbf16>
    %76 = vector.extract_strided_slice %43 {offsets = [128, 0], sizes = [16, 128], strides = [1, 1]} : vector<256x128xbf16> to vector<16x128xbf16>
    %cst_28 = arith.constant dense<0.000000e+00> : vector<32x128xf32>
    %77 = tpu.matmul %75, %76, %cst_28 {dimension_numbers = #tpu.dot_dimension_numbers<[1], [0], [0], [1], [0, 0, 1, 1], [], []>} : vector<32x16xbf16>, vector<16x128xbf16>, vector<32x128xf32> -> vector<32x128xf32>
    %78 = arith.addf %74, %77 : vector<32x128xf32>
    %79 = vector.extract_strided_slice %42 {offsets = [288, 0], sizes = [32, 16], strides = [1, 1]} : vector<512x16xbf16> to vector<32x16xbf16>
    %80 = vector.extract_strided_slice %43 {offsets = [144, 0], sizes = [16, 128], strides = [1, 1]} : vector<256x128xbf16> to vector<16x128xbf16>
    %cst_29 = arith.constant dense<0.000000e+00> : vector<32x128xf32>
    %81 = tpu.matmul %79, %80, %cst_29 {dimension_numbers = #tpu.dot_dimension_numbers<[1], [0], [0], [1], [0, 0, 1, 1], [], []>} : vector<32x16xbf16>, vector<16x128xbf16>, vector<32x128xf32> -> vector<32x128xf32>
    %82 = arith.addf %78, %81 : vector<32x128xf32>
    %83 = vector.extract_strided_slice %42 {offsets = [320, 0], sizes = [32, 16], strides = [1, 1]} : vector<512x16xbf16> to vector<32x16xbf16>
    %84 = vector.extract_strided_slice %43 {offsets = [160, 0], sizes = [16, 128], strides = [1, 1]} : vector<256x128xbf16> to vector<16x128xbf16>
    %cst_30 = arith.constant dense<0.000000e+00> : vector<32x128xf32>
    %85 = tpu.matmul %83, %84, %cst_30 {dimension_numbers = #tpu.dot_dimension_numbers<[1], [0], [0], [1], [0, 0, 1, 1], [], []>} : vector<32x16xbf16>, vector<16x128xbf16>, vector<32x128xf32> -> vector<32x128xf32>
    %86 = arith.addf %82, %85 : vector<32x128xf32>
    %87 = vector.extract_strided_slice %42 {offsets = [352, 0], sizes = [32, 16], strides = [1, 1]} : vector<512x16xbf16> to vector<32x16xbf16>
    %88 = vector.extract_strided_slice %43 {offsets = [176, 0], sizes = [16, 128], strides = [1, 1]} : vector<256x128xbf16> to vector<16x128xbf16>
    %cst_31 = arith.constant dense<0.000000e+00> : vector<32x128xf32>
    %89 = tpu.matmul %87, %88, %cst_31 {dimension_numbers = #tpu.dot_dimension_numbers<[1], [0], [0], [1], [0, 0, 1, 1], [], []>} : vector<32x16xbf16>, vector<16x128xbf16>, vector<32x128xf32> -> vector<32x128xf32>
    %90 = arith.addf %86, %89 : vector<32x128xf32>
    %91 = vector.extract_strided_slice %42 {offsets = [384, 0], sizes = [32, 16], strides = [1, 1]} : vector<512x16xbf16> to vector<32x16xbf16>
    %92 = vector.extract_strided_slice %43 {offsets = [192, 0], sizes = [16, 128], strides = [1, 1]} : vector<256x128xbf16> to vector<16x128xbf16>
    %cst_32 = arith.constant dense<0.000000e+00> : vector<32x128xf32>
    %93 = tpu.matmul %91, %92, %cst_32 {dimension_numbers = #tpu.dot_dimension_numbers<[1], [0], [0], [1], [0, 0, 1, 1], [], []>} : vector<32x16xbf16>, vector<16x128xbf16>, vector<32x128xf32> -> vector<32x128xf32>
    %94 = arith.addf %90, %93 : vector<32x128xf32>
    %95 = vector.extract_strided_slice %42 {offsets = [416, 0], sizes = [32, 16], strides = [1, 1]} : vector<512x16xbf16> to vector<32x16xbf16>
    %96 = vector.extract_strided_slice %43 {offsets = [208, 0], sizes = [16, 128], strides = [1, 1]} : vector<256x128xbf16> to vector<16x128xbf16>
    %cst_33 = arith.constant dense<0.000000e+00> : vector<32x128xf32>
    %97 = tpu.matmul %95, %96, %cst_33 {dimension_numbers = #tpu.dot_dimension_numbers<[1], [0], [0], [1], [0, 0, 1, 1], [], []>} : vector<32x16xbf16>, vector<16x128xbf16>, vector<32x128xf32> -> vector<32x128xf32>
    %98 = arith.addf %94, %97 : vector<32x128xf32>
    %99 = vector.extract_strided_slice %42 {offsets = [448, 0], sizes = [32, 16], strides = [1, 1]} : vector<512x16xbf16> to vector<32x16xbf16>
    %100 = vector.extract_strided_slice %43 {offsets = [224, 0], sizes = [16, 128], strides = [1, 1]} : vector<256x128xbf16> to vector<16x128xbf16>
    %cst_34 = arith.constant dense<0.000000e+00> : vector<32x128xf32>
    %101 = tpu.matmul %99, %100, %cst_34 {dimension_numbers = #tpu.dot_dimension_numbers<[1], [0], [0], [1], [0, 0, 1, 1], [], []>} : vector<32x16xbf16>, vector<16x128xbf16>, vector<32x128xf32> -> vector<32x128xf32>
    %102 = arith.addf %98, %101 : vector<32x128xf32>
    %103 = vector.extract_strided_slice %42 {offsets = [480, 0], sizes = [32, 16], strides = [1, 1]} : vector<512x16xbf16> to vector<32x16xbf16>
    %104 = vector.extract_strided_slice %43 {offsets = [240, 0], sizes = [16, 128], strides = [1, 1]} : vector<256x128xbf16> to vector<16x128xbf16>
    %cst_35 = arith.constant dense<0.000000e+00> : vector<32x128xf32>
    %105 = tpu.matmul %103, %104, %cst_35 {dimension_numbers = #tpu.dot_dimension_numbers<[1], [0], [0], [1], [0, 0, 1, 1], [], []>} : vector<32x16xbf16>, vector<16x128xbf16>, vector<32x128xf32> -> vector<32x128xf32>
    %106 = arith.addf %102, %105 : vector<32x128xf32>
    %107 = vector.extract_strided_slice %106 {offsets = [0, 0], sizes = [32, 32], strides = [1, 1]} : vector<32x128xf32> to vector<32x32xf32>
    %108 = vector.extract_strided_slice %106 {offsets = [0, 32], sizes = [32, 32], strides = [1, 1]} : vector<32x128xf32> to vector<32x32xf32>
    %109 = arith.maximumf %107, %108 : vector<32x32xf32>
    %110 = vector.extract_strided_slice %106 {offsets = [0, 64], sizes = [32, 32], strides = [1, 1]} : vector<32x128xf32> to vector<32x32xf32>
    %111 = vector.extract_strided_slice %106 {offsets = [0, 96], sizes = [32, 32], strides = [1, 1]} : vector<32x128xf32> to vector<32x32xf32>
    %112 = arith.maximumf %110, %111 : vector<32x32xf32>
    %113 = arith.maximumf %109, %112 : vector<32x32xf32>
    %c0_36 = arith.constant 0 : index
    %c0_37 = arith.constant 0 : index
    %114 = vector.load %arg9[%c0_36, %c0_37] : memref<1x32xf32, #tpu.memory_space<vmem>>, vector<1x32xf32>
    %115 = vector.broadcast %114 : vector<1x32xf32> to vector<32x32xf32>
    %116 = arith.addf %113, %115 : vector<32x32xf32>
    %cst_38 = arith.constant 0.000000e+00 : f32
    %117 = vector.broadcast %cst_38 : f32 to vector<32x32xf32>
    %118 = arith.maximumf %116, %117 : vector<32x32xf32>
    %cst_39 = arith.constant dense<0.000000e+00> : vector<32xf32>
    %119 = vector.multi_reduction <add>, %118, %cst_39 [0] : vector<32x32xf32> to vector<32xf32>
    %120 = vector.shape_cast %119 : vector<32xf32> to vector<1x32xf32>
    %cst_40 = arith.constant 3.200000e+01 : f32
    %121 = vector.broadcast %cst_40 : f32 to vector<1x32xf32>
    %122 = arith.divf %120, %121 : vector<1x32xf32>
    %123 = vector.broadcast %122 : vector<1x32xf32> to vector<32x32xf32>
    %124 = arith.subf %118, %123 : vector<32x32xf32>
    %125 = arith.mulf %124, %124 : vector<32x32xf32>
    %cst_41 = arith.constant dense<0.000000e+00> : vector<32xf32>
    %126 = vector.multi_reduction <add>, %125, %cst_41 [0] : vector<32x32xf32> to vector<32xf32>
    %127 = vector.shape_cast %126 : vector<32xf32> to vector<1x32xf32>
    %cst_42 = arith.constant 3.200000e+01 : f32
    %128 = vector.broadcast %cst_42 : f32 to vector<1x32xf32>
    %129 = arith.divf %127, %128 : vector<1x32xf32>
    %130 = vector.broadcast %122 : vector<1x32xf32> to vector<32x32xf32>
    %131 = arith.subf %118, %130 : vector<32x32xf32>
    %cst_43 = arith.constant 9.99999974E-6 : f32
    %132 = vector.broadcast %cst_43 : f32 to vector<1x32xf32>
    %133 = arith.addf %129, %132 : vector<1x32xf32>
    %134 = math.rsqrt %133 : vector<1x32xf32>
    %135 = vector.broadcast %134 : vector<1x32xf32> to vector<32x32xf32>
    %136 = arith.mulf %131, %135 : vector<32x32xf32>
    %c0_44 = arith.constant 0 : index
    %c0_45 = arith.constant 0 : index
    %137 = vector.load %arg10[%c0_44, %c0_45] : memref<1x32xf32, #tpu.memory_space<vmem>>, vector<1x32xf32>
    %138 = vector.broadcast %137 : vector<1x32xf32> to vector<32x32xf32>
    %139 = arith.mulf %136, %138 : vector<32x32xf32>
    %c0_46 = arith.constant 0 : index
    %c0_47 = arith.constant 0 : index
    %140 = vector.load %arg11[%c0_46, %c0_47] : memref<1x32xf32, #tpu.memory_space<vmem>>, vector<1x32xf32>
    %141 = vector.broadcast %140 : vector<1x32xf32> to vector<32x32xf32>
    %142 = arith.addf %139, %141 : vector<32x32xf32>
    %143 = arith.truncf %142 : vector<32x32xf32> to vector<32x32xbf16>
    %c0_48 = arith.constant 0 : index
    %c0_49 = arith.constant 0 : index
    %144 = vector.load %arg12[%c0_48, %c0_49] : memref<32x512xbf16, #tpu.memory_space<vmem>>, vector<32x512xbf16>
    %cst_50 = arith.constant dense<0.000000e+00> : vector<32x512xf32>
    %145 = tpu.matmul %143, %144, %cst_50 {dimension_numbers = #tpu.dot_dimension_numbers<[1], [0], [0], [1], [0, 0, 1, 1], [], []>} : vector<32x32xbf16>, vector<32x512xbf16>, vector<32x512xf32> -> vector<32x512xf32>
    %c0_51 = arith.constant 0 : index
    %c0_52 = arith.constant 0 : index
    %146 = vector.load %arg14[%c0_51, %c0_52] : memref<2x32xf32, #tpu.memory_space<vmem>>, vector<2x32xf32>
    %c0_53 = arith.constant 0 : index
    %c0_54 = arith.constant 0 : index
    %147 = vector.load %arg13[%c0_53, %c0_54] : memref<32x512xf32, #tpu.memory_space<vmem>>, vector<32x512xf32>
    %148 = arith.mulf %145, %147 : vector<32x512xf32>
    %cst_55 = arith.constant dense<0.000000e+00> : vector<2x512xf32>
    %149 = tpu.matmul %146, %148, %cst_55 {dimension_numbers = #tpu.dot_dimension_numbers<[1], [0], [0], [1], [0, 0, 1, 1], [], []>} : vector<2x32xf32>, vector<32x512xf32>, vector<2x512xf32> -> vector<2x512xf32>
    %c0_56 = arith.constant 0 : index
    %c0_57 = arith.constant 0 : index
    %150 = vector.load %arg15[%c0_56, %c0_57] : memref<512x32xf32, #tpu.memory_space<vmem>>, vector<512x32xf32>
    %cst_58 = arith.constant dense<0.000000e+00> : vector<2x32xf32>
    %151 = tpu.matmul %149, %150, %cst_58 {dimension_numbers = #tpu.dot_dimension_numbers<[1], [0], [0], [1], [0, 0, 1, 1], [], []>} : vector<2x512xf32>, vector<512x32xf32>, vector<2x32xf32> -> vector<2x32xf32>
    %c0_59 = arith.constant 0 : index
    %c0_60 = arith.constant 0 : index
    %152 = vector.load %arg16[%c0_59, %c0_60] : memref<1x32xf32, #tpu.memory_space<vmem>>, vector<1x32xf32>
    %153 = vector.broadcast %152 : vector<1x32xf32> to vector<2x32xf32>
    %154 = arith.addf %151, %153 : vector<2x32xf32>
    %c0_61 = arith.constant 0 : index
    %c0_62 = arith.constant 0 : index
    %155 = vector.load %arg1[%c0_61, %c0_62] : memref<2x8xf32, #tpu.memory_space<vmem>>, vector<2x8xf32>
    %156 = arith.truncf %155 : vector<2x8xf32> to vector<2x8xbf16>
    %c0_63 = arith.constant 0 : index
    %c0_64 = arith.constant 0 : index
    %157 = vector.load %arg17[%c0_63, %c0_64] : memref<8x32xbf16, #tpu.memory_space<vmem>>, vector<8x32xbf16>
    %cst_65 = arith.constant dense<0.000000e+00> : vector<2x32xf32>
    %158 = tpu.matmul %156, %157, %cst_65 {dimension_numbers = #tpu.dot_dimension_numbers<[1], [0], [0], [1], [0, 0, 1, 1], [], []>} : vector<2x8xbf16>, vector<8x32xbf16>, vector<2x32xf32> -> vector<2x32xf32>
    %c0_66 = arith.constant 0 : index
    %c0_67 = arith.constant 0 : index
    %159 = vector.load %arg18[%c0_66, %c0_67] : memref<1x32xf32, #tpu.memory_space<vmem>>, vector<1x32xf32>
    %160 = vector.broadcast %159 : vector<1x32xf32> to vector<2x32xf32>
    %161 = arith.addf %158, %160 : vector<2x32xf32>
    %cst_68 = arith.constant 0.000000e+00 : f32
    %162 = vector.broadcast %cst_68 : f32 to vector<2x32xf32>
    %163 = arith.maximumf %161, %162 : vector<2x32xf32>
    %c0_69 = arith.constant 0 : index
    %c0_70 = arith.constant 0 : index
    %164 = vector.load %arg19[%c0_69, %c0_70] : memref<68x32xbf16, #tpu.memory_space<vmem>>, vector<68x32xbf16>
    %165 = arith.truncf %163 : vector<2x32xf32> to vector<2x32xbf16>
    %166 = vector.extract_strided_slice %164 {offsets = [0, 0], sizes = [32, 32], strides = [1, 1]} : vector<68x32xbf16> to vector<32x32xbf16>
    %cst_71 = arith.constant dense<0.000000e+00> : vector<2x32xf32>
    %167 = tpu.matmul %165, %166, %cst_71 {dimension_numbers = #tpu.dot_dimension_numbers<[1], [0], [0], [1], [0, 0, 1, 1], [], []>} : vector<2x32xbf16>, vector<32x32xbf16>, vector<2x32xf32> -> vector<2x32xf32>
    %168 = arith.truncf %154 : vector<2x32xf32> to vector<2x32xbf16>
    %169 = vector.extract_strided_slice %164 {offsets = [32, 0], sizes = [32, 32], strides = [1, 1]} : vector<68x32xbf16> to vector<32x32xbf16>
    %cst_72 = arith.constant dense<0.000000e+00> : vector<2x32xf32>
    %170 = tpu.matmul %168, %169, %cst_72 {dimension_numbers = #tpu.dot_dimension_numbers<[1], [0], [0], [1], [0, 0, 1, 1], [], []>} : vector<2x32xbf16>, vector<32x32xbf16>, vector<2x32xf32> -> vector<2x32xf32>
    %171 = arith.addf %167, %170 : vector<2x32xf32>
    %c0_73 = arith.constant 0 : index
    %c0_74 = arith.constant 0 : index
    %172 = vector.load %arg2[%c0_73, %c0_74] : memref<2x4xf32, #tpu.memory_space<vmem>>, vector<2x4xf32>
    %173 = arith.truncf %172 : vector<2x4xf32> to vector<2x4xbf16>
    %174 = vector.extract_strided_slice %164 {offsets = [64, 0], sizes = [4, 32], strides = [1, 1]} : vector<68x32xbf16> to vector<4x32xbf16>
    %cst_75 = arith.constant dense<0.000000e+00> : vector<2x32xf32>
    %175 = tpu.matmul %173, %174, %cst_75 {dimension_numbers = #tpu.dot_dimension_numbers<[1], [0], [0], [1], [0, 0, 1, 1], [], []>} : vector<2x4xbf16>, vector<4x32xbf16>, vector<2x32xf32> -> vector<2x32xf32>
    %176 = arith.addf %171, %175 : vector<2x32xf32>
    %c0_76 = arith.constant 0 : index
    %c0_77 = arith.constant 0 : index
    %177 = vector.load %arg20[%c0_76, %c0_77] : memref<1x32xf32, #tpu.memory_space<vmem>>, vector<1x32xf32>
    %178 = vector.broadcast %177 : vector<1x32xf32> to vector<2x32xf32>
    %179 = arith.addf %176, %178 : vector<2x32xf32>
    %cst_78 = arith.constant 0.000000e+00 : f32
    %180 = vector.broadcast %cst_78 : f32 to vector<2x32xf32>
    %181 = arith.maximumf %179, %180 : vector<2x32xf32>
    %182 = arith.truncf %181 : vector<2x32xf32> to vector<2x32xbf16>
    %c0_79 = arith.constant 0 : index
    %c0_80 = arith.constant 0 : index
    %183 = vector.load %arg21[%c0_79, %c0_80] : memref<32x32xbf16, #tpu.memory_space<vmem>>, vector<32x32xbf16>
    %cst_81 = arith.constant dense<0.000000e+00> : vector<2x32xf32>
    %184 = tpu.matmul %182, %183, %cst_81 {dimension_numbers = #tpu.dot_dimension_numbers<[1], [0], [0], [1], [0, 0, 1, 1], [], []>} : vector<2x32xbf16>, vector<32x32xbf16>, vector<2x32xf32> -> vector<2x32xf32>
    %c0_82 = arith.constant 0 : index
    %c0_83 = arith.constant 0 : index
    %185 = vector.load %arg22[%c0_82, %c0_83] : memref<1x32xf32, #tpu.memory_space<vmem>>, vector<1x32xf32>
    %186 = vector.broadcast %185 : vector<1x32xf32> to vector<2x32xf32>
    %187 = arith.addf %184, %186 : vector<2x32xf32>
    %cst_84 = arith.constant 0.000000e+00 : f32
    %188 = vector.broadcast %cst_84 : f32 to vector<2x32xf32>
    %189 = arith.maximumf %187, %188 : vector<2x32xf32>
    %190 = arith.truncf %189 : vector<2x32xf32> to vector<2x32xbf16>
    %c0_85 = arith.constant 0 : index
    %c0_86 = arith.constant 0 : index
    %191 = vector.load %arg23[%c0_85, %c0_86] : memref<32x32xbf16, #tpu.memory_space<vmem>>, vector<32x32xbf16>
    %cst_87 = arith.constant dense<0.000000e+00> : vector<2x32xf32>
    %192 = tpu.matmul %190, %191, %cst_87 {dimension_numbers = #tpu.dot_dimension_numbers<[1], [0], [0], [1], [0, 0, 1, 1], [], []>} : vector<2x32xbf16>, vector<32x32xbf16>, vector<2x32xf32> -> vector<2x32xf32>
    %c0_88 = arith.constant 0 : index
    %c0_89 = arith.constant 0 : index
    %193 = vector.load %arg24[%c0_88, %c0_89] : memref<1x32xf32, #tpu.memory_space<vmem>>, vector<1x32xf32>
    %194 = vector.broadcast %193 : vector<1x32xf32> to vector<2x32xf32>
    %195 = arith.addf %192, %194 : vector<2x32xf32>
    %cst_90 = arith.constant 0.000000e+00 : f32
    %196 = vector.broadcast %cst_90 : f32 to vector<2x32xf32>
    %197 = arith.maximumf %195, %196 : vector<2x32xf32>
    %198 = arith.truncf %197 : vector<2x32xf32> to vector<2x32xbf16>
    %c0_91 = arith.constant 0 : index
    %c0_92 = arith.constant 0 : index
    %199 = vector.load %arg25[%c0_91, %c0_92] : memref<32x1xbf16, #tpu.memory_space<vmem>>, vector<32x1xbf16>
    %cst_93 = arith.constant dense<0.000000e+00> : vector<2x1xf32>
    %200 = tpu.matmul %198, %199, %cst_93 {dimension_numbers = #tpu.dot_dimension_numbers<[1], [0], [0], [1], [0, 0, 1, 1], [], []>} : vector<2x32xbf16>, vector<32x1xbf16>, vector<2x1xf32> -> vector<2x1xf32>
    %c0_94 = arith.constant 0 : index
    %c0_95 = arith.constant 0 : index
    %201 = vector.load %arg26[%c0_94, %c0_95] : memref<1x1xf32, #tpu.memory_space<vmem>>, vector<1x1xf32>
    %202 = vector.broadcast %201 : vector<1x1xf32> to vector<2x1xf32>
    %203 = arith.addf %200, %202 : vector<2x1xf32>
    %c0_96 = arith.constant 0 : index
    %c0_97 = arith.constant 0 : index
    %204 = vector.load %arg27[%c0_96, %c0_97] : memref<2x1xf32, #tpu.memory_space<vmem>>, vector<2x1xf32>
    tpu.vector_store %arg27[%c0_96, %c0_97], %203 {strides = array<i32>} : memref<2x1xf32, #tpu.memory_space<vmem>>, vector<2x1xf32>,
    return
  }
}

</mosaic_0001>

<bundles_post_ra>
// kernel: soft_q_forward.1
= control target key start
LH: loop header
LB: loop body
LE: loop exit
PB: predicated region body
PF: predicated region fallthrough
CT: control target
= control target key end

     0   :  { %vm137_vm0 = vcmask 392192   ;;  %vm458_vm1 = vcmask 130048   ;;  %vm2232_vm2 = vcmask 261120   ;;  %vm2863_vm3 = vcmask 1043456   ;;  %s5363_s4 = inlined_call_operand.vmem [shape: bf16[48,64], index: 4, kind: input, shape index: {}]   ;;  %s5364_s0 = inlined_call_operand.vmem [shape: f32[128,48], index: 0, kind: input, shape index: {}]   ;;  %s5365_s5 = inlined_call_operand.vmem [shape: f32[1,16], index: 5, kind: input, shape index: {}]   ;;  %s5366_s3 = inlined_call_operand.vmem [shape: f32[512,128], index: 3, kind: input, shape index: {}]   ;;  %s5367_s6 = inlined_call_operand.vmem [shape: f32[1,16], index: 6, kind: input, shape index: {}]   ;;  %s5368_s7 = inlined_call_operand.vmem [shape: f32[1,16], index: 7, kind: input, shape index: {}]   ;;  %s5369_s8 = inlined_call_operand.vmem [shape: bf16[256,128], index: 8, kind: input, shape index: {}]   ;;  %s5370_s12 = inlined_call_operand.vmem [shape: bf16[32,512], index: 12, kind: input, shape index: {}]   ;;  %s5371_s9 = inlined_call_operand.vmem [shape: f32[1,32], index: 9, kind: input, shape index: {}]   ;;  %s5372_s10 = inlined_call_operand.vmem [shape: f32[1,32], index: 10, kind: input, shape index: {}]   ;;  %s5373_s11 = inlined_call_operand.vmem [shape: f32[1,32], index: 11, kind: input, shape index: {}]   ;;  %s5374_s15 = inlined_call_operand.vmem [shape: f32[512,32], index: 15, kind: input, shape index: {}]   ;;  %s5375_s13 = inlined_call_operand.vmem [shape: f32[32,512], index: 13, kind: input, shape index: {}]   ;;  %s5376_s14 = inlined_call_operand.vmem [shape: f32[2,32], index: 14, kind: input, shape index: {}]   ;;  %s5377_s17 = inlined_call_operand.vmem [shape: bf16[8,32], index: 17, kind: input, shape index: {}]   ;;  %s5378_s1 = inlined_call_operand.vmem [shape: f32[2,8], index: 1, kind: input, shape index: {}]   ;;  %s5379_s19 = inlined_call_operand.vmem [shape: bf16[68,32], index: 19, kind: input, shape index: {}]   ;;  %s5380_s2 = inlined_call_operand.vmem [shape: f32[2,4], index: 2, kind: input, shape index: {}]   ;;  %s5381_s16 = inlined_call_operand.vmem [shape: f32[1,32], index: 16, kind: input, shape index: {}]   ;;  %s5382_s18 = inlined_call_operand.vmem [shape: f32[1,32], index: 18, kind: input, shape index: {}]   ;;  %s5383_s21 = inlined_call_operand.vmem [shape: bf16[32,32], index: 21, kind: input, shape index: {}]   ;;  %s5384_s20 = inlined_call_operand.vmem [shape: f32[1,32], index: 20, kind: input, shape index: {}]   ;;  %s5385_s23 = inlined_call_operand.vmem [shape: bf16[32,32], index: 23, kind: input, shape index: {}]   ;;  %s5386_s22 = inlined_call_operand.vmem [shape: f32[1,32], index: 22, kind: input, shape index: {}]   ;;  %s5387_s25 = inlined_call_operand.vmem [shape: bf16[32,1], index: 25, kind: input, shape index: {}]   ;;  %s5388_s26 = inlined_call_operand.<no memory space> [shape: f32[1,1], index: 26, kind: input, shape index: {}]   ;;  %s5389_s24 = inlined_call_operand.vmem [shape: f32[1,32], index: 24, kind: input, shape index: {}]   ;;  %s5390_s27 = inlined_call_operand.vmem [shape: f32[2,1], index: 27, kind: output, shape index: {}]  }
   0x1   :  { %5397 = sst [smem:[#allocation3_spill]] %s5363_s4  ;;  %vm4154_vm4 = vmmov 0   ;;  %vm2859_vm5 = vcmask 64512   ;;  %vm3035_vm6 = vcmask 1041408   ;;  %vm3031_vm7 = vcmask 31744  }
   0x2   :  { %5398 = sst [smem:[#allocation4_spill]] %s5364_s0  ;;  %vm3292_vm8 = vcmask 1024  }
   0x3   :  { %5399 = sst [smem:[#allocation5_spill]] %s5365_s5  ;;  %s5410_s0 = sld [smem:[#allocation4_spill]] }
   0x4   :  { %5400 = sst [smem:[#allocation6_spill]] %s5366_s3 }
   0x5   :  { %5401 = sst [smem:[#allocation7_spill]] %s5367_s6 }
   0x6   :  { %5402 = sst [smem:[#allocation8_spill]] %s5368_s7  ;;  %s5413_s28 = sld [smem:[#allocation7_spill]] }
   0x7   :  { %5403 = sst [smem:[#allocation9_spill]] %s5369_s8  ;;  %s5414_s3 = sld [smem:[#allocation8_spill]] }
   0x8   :  { %5404 = sst [smem:[#allocation10_spill]] %s5370_s12  ;;  %s5411_s12 = sld [smem:[#allocation5_spill]] }
   0x9   :  { %5405 = sst [smem:[#allocation11_spill]] %s5371_s9  ;;  %v89_v2 = vld [vmem:[%s5410_s0] sm:$0xff]  ;;  %v90_v3 = vld [vmem:[%s5410_s0 + $0x8] sm:$0xff]  ;;  %v91_v6 = vld [vmem:[%s5410_s0 + $0x10] sm:$0xff]  ;;  %s5415_s30 = sld [smem:[#allocation9_spill]] }
   0xa   :  { %5406 = sst [smem:[#allocation12_spill]] %s5372_s10  ;;  %s5409_s9 = sld [smem:[#allocation3_spill]]  ;;  %v105_v5 = vpack.c.bf16 %v90_v3, %v89_v2  ;;  %v92_v7 = vld [vmem:[%s5410_s0 + $0x18] sm:$0xff]  ;;  %v93_v8 = vld [vmem:[%s5410_s0 + $0x20] sm:$0xff]  ;;  %v94_v9 = vld [vmem:[%s5410_s0 + $0x28] sm:$0xff] }
   0xb   :  { %5407 = sst [smem:[#allocation13_spill]] %s5373_s11  ;;  %v106_v10 = vpack.c.bf16 %v92_v7, %v91_v6  ;;  %v107_v11 = vpack.c.bf16 %v94_v9, %v93_v8  ;;  %v95_v12 = vld [vmem:[%s5410_s0 + $0x30] sm:$0xff]  ;;  %v96_v13 = vld [vmem:[%s5410_s0 + $0x38] sm:$0xff]  ;;  %v97_v14 = vld [vmem:[%s5410_s0 + $0x40] sm:$0xff]  ;;  %s5412_s10 = sld [smem:[#allocation6_spill]] }
   0xc   :  { %5408 = sst [smem:[#allocation14_spill]] %s5374_s15  ;;  %3634 = vmatprep.mubr.msk.bf16.mxu0 %vm137_vm0, %v105_v5  ;;  %v98_v15 = vld [vmem:[%s5410_s0 + $0x48] sm:$0xff]  ;;  %v108_v16 = vpack.c.bf16 %v96_v13, %v95_v12  ;;  %v99_v18 = vld [vmem:[%s5410_s0 + $0x50] sm:$0xff]  ;;  %v100_v19 = vld [vmem:[%s5410_s0 + $0x58] sm:$0xff]  ;;  %s4149_s15 = smov 112  }
   0xd   :  { %v109_v17 = vpack.c.bf16 %v98_v15, %v97_v14  ;;  %v101_v20 = vld [vmem:[%s5410_s0 + $0x60] sm:$0xff]  ;;  %v102_v21 = vld [vmem:[%s5410_s0 + $0x68] sm:$0xff]  ;;  %v110_v22 = vpack.c.bf16 %v100_v19, %v99_v18  ;;  %v103_v24 = vld [vmem:[%s5410_s0 + $0x70] sm:$0xff]  ;;  %s5418_s7 = sld [smem:[#allocation12_spill]] }
   0xe   :  { %v111_v23 = vpack.c.bf16 %v102_v21, %v101_v20  ;;  %v104_v25 = vld [vmem:[%s5410_s0 + $0x78] sm:$0xff]  ;;  %s4150_s0 = smov 96  }
   0xf   :  { %v112_v26 = vpack.c.bf16 %v104_v25, %v103_v24 }
  0x10   :  { %v4104_v0 = vld [vmem:[%s5409_s9] sm:$0xff]   ;;  %v4105_v1 = vld [vmem:[%s5409_s9 + $0x8] sm:$0xff]   ;;  %v4106_v4 = vld [vmem:[%s5409_s9 + $0x10] sm:$0xff]  }
  0x11   :  { %3628 = vmatprep.subr.bf16.mxu0 %v4104_v0 }
  0x12   :  { %3629 = vmatpush3.bf16.msra.mxu0 %v4104_v0 }
  0x13   :  { %3630 = vmatprep.subr.bf16.mxu0 %v4105_v1 }
  0x16   :  { %3631 = vmatpush3.bf16.msra.mxu0 %v4105_v1 }
  0x17   :  { %3632 = vmatprep.subr.bf16.mxu0 %v4106_v4 }
  0x1a   :  { %3633 = vmatpush3.bf16.msra.mxu0 %v4106_v4 }
  0x1d   :  { %3635 = vmatmul.mubr.msk.bf16.vlgmr.msra.gmra.mrb[0].mxu0 %vm137_vm0, %v106_v10 }
  0x1e   :  { %3638 = vmatprep.mubr.msk.bf16.mxu0 %vm137_vm0, %v107_v11  ;;  %v4428_v11 = vld [vmem:[%s5411_s12] ss:$0 sm:$0xff]  ;;  %s5417_s12 = sld [smem:[#allocation11_spill]] }
  0x25   :  { %3639 = vmatmul.mubr.msk.bf16.gmra.mrb[4].mxu0 %vm137_vm0, %v108_v16 }
  0x26   :  { %3642 = vmatprep.mubr.msk.bf16.mxu0 %vm137_vm0, %v109_v17 }
  0x2d   :  { %3643 = vmatmul.mubr.msk.bf16.gmra.mrb[8].mxu0 %vm137_vm0, %v110_v22 }
  0x2e   :  { %3646 = vmatprep.mubr.msk.bf16.mxu0 %vm137_vm0, %v111_v23 }
  0x35   :  { %3647 = vmatmul.mubr.msk.bf16.gmra.mrb[12].mxu0 %vm137_vm0, %v112_v26 }
  0xf0   :  { %v3636_v27 = vpop.f32.mrb[0].mxu0 }
  0xf1   :  { %279 = vrot.lane.b32.xlu1 %v3636_v27, %s4149_s15  ;;  %v196_v28 = vpop.f32.mrb[1].mxu0 }
  0xf2   :  { %275 = vrot.lane.b32.xlu0 %v196_v28, %s4149_s15  ;;  %v3637_v29 = vpop.f32.mrb[2].mxu0 }
  0xf3   :  { %v199_v30 = vpop.f32.mrb[3].mxu0 }
  0xf5   :  { %281 = vrot.lane.b32.xlu1 %v3637_v29, %s4149_s15 }
  0xf6   :  { %277 = vrot.lane.b32.xlu0 %v199_v30, %s4149_s15 }
  0xf8   :  { %v3640_v31 = vpop.f32.mrb[4].mxu0 }
  0xf9   :  { %v212_v32 = vpop.f32.mrb[5].mxu0 }
  0xfa   :  { %283 = vrot.lane.b32.xlu0 %v212_v32, %s4149_s15  ;;  %v3641_v33 = vpop.f32.mrb[6].mxu0 }
  0xfb   :  { %v215_v34 = vpop.f32.mrb[7].mxu0 }
  0xfc   :  { %285 = vrot.lane.b32.xlu1 %v215_v34, %s4149_s15 }
  0xfe   :  { %287 = vrot.lane.b32.xlu0 %v3640_v31, %s4149_s15 }
 0x100   :  { %289 = vrot.lane.b32.xlu1 %v3641_v33, %s4149_s15  ;;  %v3644_v35 = vpop.f32.mrb[8].mxu0 }
 0x101   :  { %v228_v36 = vpop.f32.mrb[9].mxu0 }
 0x102   :  { %291 = vrot.lane.b32.xlu0 %v228_v36, %s4149_s15  ;;  %v3645_v37 = vpop.f32.mrb[10].mxu0 }
 0x103   :  { %v231_v38 = vpop.f32.mrb[11].mxu0 }
 0x104   :  { %293 = vrot.lane.b32.xlu1 %v231_v38, %s4149_s15 }
 0x106   :  { %295 = vrot.lane.b32.xlu0 %v3644_v35, %s4149_s15 }
 0x108   :  { %297 = vrot.lane.b32.xlu1 %v3645_v37, %s4149_s15  ;;  %v3648_v39 = vpop.f32.mrb[12].mxu0 }
 0x109   :  { %v244_v40 = vpop.f32.mrb[13].mxu0 }
 0x10a   :  { %299 = vrot.lane.b32.xlu0 %v244_v40, %s4149_s15  ;;  %v3649_v41 = vpop.f32.mrb[14].mxu0 }
 0x10b   :  { %v247_v42 = vpop.f32.mrb[15].mxu0 }
 0x10c   :  { %301 = vrot.lane.b32.xlu1 %v247_v42, %s4149_s15 }
 0x10e   :  { %303 = vrot.lane.b32.xlu0 %v3648_v39, %s4149_s15 }
 0x110   :  { %305 = vrot.lane.b32.xlu1 %v3649_v41, %s4149_s15  ;;  %s5416_s15 = sld [smem:[#allocation10_spill]] }
 0x163   :  { %v280_v43 = vpop.permute.xlu1 %279 }
 0x164   :  { %v276_v44 = vpop.permute.xlu0 %275  ;;  %v325_v47 = vmax.f32 %v3636_v27, %v280_v43 }
 0x165   :  { %v323_v45 = vmax.f32 %v196_v28, %v276_v44 }
 0x167   :  { %355 = vrot.lane.b32.xlu0 %v323_v45, %s4150_s0  ;;  %v282_v49 = vpop.permute.xlu1 %281 }
 0x168   :  { %v278_v46 = vpop.permute.xlu0 %277  ;;  %v326_v51 = vmax.f32 %v3637_v29, %v282_v49 }
 0x169   :  { %v324_v48 = vmax.f32 %v199_v30, %v278_v46 }
 0x16b   :  { %359 = vrot.lane.b32.xlu0 %v325_v47, %s4150_s0  ;;  %357 = vrot.lane.b32.xlu1 %v324_v48, %s4150_s0 }
 0x16c   :  { %v284_v50 = vpop.permute.xlu0 %283 }
 0x16d   :  { %v327_v52 = vmax.f32 %v212_v32, %v284_v50 }
 0x16e   :  { %v286_v53 = vpop.permute.xlu1 %285 }
 0x16f   :  { %363 = vrot.lane.b32.xlu0 %v327_v52, %s4150_s0  ;;  %361 = vrot.lane.b32.xlu1 %v326_v51, %s4150_s0  ;;  %v4381_v55 = vmax.f32 %v215_v34, %v286_v53 }
 0x170   :  { %v288_v54 = vpop.permute.xlu0 %287 }
 0x171   :  { %v4383_v56 = vmax.f32 %v3640_v31, %v288_v54 }
 0x172   :  { %v290_v57 = vpop.permute.xlu1 %289 }
 0x173   :  { %367 = vrot.lane.b32.xlu0 %v4383_v56, %s4150_s0  ;;  %365 = vrot.lane.b32.xlu1 %v4381_v55, %s4150_s0  ;;  %v4389_v59 = vmax.f32 %v3641_v33, %v290_v57 }
 0x174   :  { %v292_v58 = vpop.permute.xlu0 %291 }
 0x175   :  { %v4391_v60 = vmax.f32 %v228_v36, %v292_v58 }
 0x176   :  { %v294_v61 = vpop.permute.xlu1 %293 }
 0x177   :  { %371 = vrot.lane.b32.xlu0 %v4391_v60, %s4150_s0  ;;  %369 = vrot.lane.b32.xlu1 %v4389_v59, %s4150_s0  ;;  %v4397_v63 = vmax.f32 %v231_v38, %v294_v61 }
 0x178   :  { %v296_v62 = vpop.permute.xlu0 %295 }
 0x179   :  { %v4399_v0 = vmax.f32 %v3644_v35, %v296_v62 }
 0x17a   :  { %v298_v1 = vpop.permute.xlu1 %297 }
 0x17b   :  { %375 = vrot.lane.b32.xlu0 %v4399_v0, %s4150_s0  ;;  %373 = vrot.lane.b32.xlu1 %v4397_v63, %s4150_s0  ;;  %v4405_v3 = vmax.f32 %v3645_v37, %v298_v1 }
 0x17c   :  { %v300_v2 = vpop.permute.xlu0 %299 }
 0x17d   :  { %v4407_v4 = vmax.f32 %v244_v40, %v300_v2 }
 0x17e   :  { %v302_v5 = vpop.permute.xlu1 %301 }
 0x17f   :  { %379 = vrot.lane.b32.xlu0 %v4407_v4, %s4150_s0  ;;  %377 = vrot.lane.b32.xlu1 %v4405_v3, %s4150_s0  ;;  %v4413_v7 = vmax.f32 %v247_v42, %v302_v5 }
 0x180   :  { %v304_v6 = vpop.permute.xlu0 %303 }
 0x181   :  { %v4415_v8 = vmax.f32 %v3648_v39, %v304_v6 }
 0x182   :  { %v306_v9 = vpop.permute.xlu1 %305 }
 0x183   :  { %383 = vrot.lane.b32.xlu0 %v4415_v8, %s4150_s0  ;;  %381 = vrot.lane.b32.xlu1 %v4413_v7, %s4150_s0  ;;  %v4421_v10 = vmax.f32 %v3649_v41, %v306_v9 }
 0x187   :  { %385 = vrot.lane.b32.xlu1 %v4421_v10, %s4150_s0 }
 0x1d9   :  { %v356_v12 = vpop.permute.xlu0 %355 }
 0x1da   :  { %v403_v13 = vmax.f32 %v323_v45, %v356_v12 }
 0x1dc   :  { %v4431_v14 = vadd.f32 %v4428_v11, %v403_v13 }
 0x1dd   :  { %v360_v15 = vpop.permute.xlu0 %359  ;;  %v358_v16 = vpop.permute.xlu1 %357 }
 0x1de   :  { %v405_v17 = vmax.f32 %v325_v47, %v360_v15  ;;  %v404_v18 = vmax.f32 %v324_v48, %v358_v16  ;;  %v442_v19 = vmax.f32 %v4431_v14, 0.0 }
 0x1e0   :  { %v4435_v20 = vadd.f32 %v4428_v11, %v405_v17  ;;  %v4438_v21 = vadd.f32 %v4428_v11, %v404_v18  ;;  %v459_v28 = vsel %vm458_vm1, %v442_v19, 0.0 }
 0x1e1   :  { %v364_v22 = vpop.permute.xlu0 %363  ;;  %v362_v23 = vpop.permute.xlu1 %361 }
 0x1e2   :  { %v444_v24 = vmax.f32 %v4435_v20, 0.0  ;;  %v443_v25 = vmax.f32 %v4438_v21, 0.0  ;;  %v407_v26 = vmax.f32 %v327_v52, %v364_v22  ;;  %v406_v27 = vmax.f32 %v326_v51, %v362_v23 }
 0x1e4   :  { %v460_v29 = vsel %vm458_vm1, %v443_v25, 0.0  ;;  %v4449_v30 = vadd.f32 %v4428_v11, %v407_v26  ;;  %v4452_v31 = vadd.f32 %v4428_v11, %v406_v27  ;;  %v462_v32 = vsel %vm458_vm1, %v444_v24, 0.0 }
 0x1e5   :  { %v461_v33 = vadd.f32 %v460_v29, %v459_v28  ;;  %v368_v34 = vpop.permute.xlu0 %367  ;;  %v366_v35 = vpop.permute.xlu1 %365 }
 0x1e6   :  { %v446_v36 = vmax.f32 %v4449_v30, 0.0  ;;  %v445_v37 = vmax.f32 %v4452_v31, 0.0  ;;  %v409_v38 = vmax.f32 %v4383_v56, %v368_v34  ;;  %v408_v39 = vmax.f32 %v4381_v55, %v366_v35 }
 0x1e7   :  { %v463_v40 = vadd.f32 %v462_v32, %v461_v33 }
 0x1e8   :  { %v464_v41 = vsel %vm458_vm1, %v445_v37, 0.0  ;;  %v4465_v42 = vadd.f32 %v4428_v11, %v409_v38  ;;  %v4468_v43 = vadd.f32 %v4428_v11, %v408_v39  ;;  %v466_v44 = vsel %vm458_vm1, %v446_v36, 0.0 }
 0x1e9   :  { %v465_v45 = vadd.f32 %v464_v41, %v463_v40  ;;  %v372_v46 = vpop.permute.xlu0 %371  ;;  %v370_v47 = vpop.permute.xlu1 %369 }
 0x1ea   :  { %v448_v48 = vmax.f32 %v4465_v42, 0.0  ;;  %v447_v49 = vmax.f32 %v4468_v43, 0.0  ;;  %v411_v50 = vmax.f32 %v4391_v60, %v372_v46  ;;  %v410_v51 = vmax.f32 %v4389_v59, %v370_v47  ;;  %v632_v46 = vld [vmem:[%s5412_s10] sm:$0xff] }
 0x1eb   :  { %v467_v52 = vadd.f32 %v466_v44, %v465_v45  ;;  %3682 = vmatprep.mubr.f32.mxu1 %v632_v46 }
 0x1ec   :  { %v468_v53 = vsel %vm458_vm1, %v447_v49, 0.0  ;;  %v4481_v54 = vadd.f32 %v4428_v11, %v411_v50  ;;  %v4484_v55 = vadd.f32 %v4428_v11, %v410_v51  ;;  %v470_v56 = vsel %vm458_vm1, %v448_v48, 0.0 }
 0x1ed   :  { %v469_v57 = vadd.f32 %v468_v53, %v467_v52  ;;  %v376_v58 = vpop.permute.xlu0 %375  ;;  %v374_v60 = vpop.permute.xlu1 %373 }
 0x1ee   :  { %v450_v59 = vmax.f32 %v4481_v54, 0.0  ;;  %v449_v61 = vmax.f32 %v4484_v55, 0.0  ;;  %v413_v62 = vmax.f32 %v4399_v0, %v376_v58  ;;  %v412_v1 = vmax.f32 %v4397_v63, %v374_v60 }
 0x1ef   :  { %v471_v2 = vadd.f32 %v470_v56, %v469_v57 }
 0x1f0   :  { %v472_v5 = vsel %vm458_vm1, %v449_v61, 0.0  ;;  %v4497_v6 = vadd.f32 %v4428_v11, %v413_v62  ;;  %v4500_v9 = vadd.f32 %v4428_v11, %v412_v1  ;;  %v474_v12 = vsel %vm458_vm1, %v450_v59, 0.0 }
 0x1f1   :  { %v473_v13 = vadd.f32 %v472_v5, %v471_v2  ;;  %v380_v15 = vpop.permute.xlu0 %379  ;;  %v378_v0 = vpop.permute.xlu1 %377 }
 0x1f2   :  { %v452_v63 = vmax.f32 %v4497_v6, 0.0  ;;  %v451_v16 = vmax.f32 %v4500_v9, 0.0  ;;  %v415_v17 = vmax.f32 %v4407_v4, %v380_v15  ;;  %v414_v18 = vmax.f32 %v4405_v3, %v378_v0 }
 0x1f3   :  { %v475_v22 = vadd.f32 %v474_v12, %v473_v13 }
 0x1f4   :  { %v476_v23 = vsel %vm458_vm1, %v451_v16, 0.0  ;;  %v4513_v26 = vadd.f32 %v4428_v11, %v415_v17  ;;  %v4516_v27 = vadd.f32 %v4428_v11, %v414_v18  ;;  %v478_v28 = vsel %vm458_vm1, %v452_v63, 0.0 }
 0x1f5   :  { %v477_v29 = vadd.f32 %v476_v23, %v475_v22  ;;  %v384_v32 = vpop.permute.xlu0 %383  ;;  %v382_v4 = vpop.permute.xlu1 %381 }
 0x1f6   :  { %v454_v3 = vmax.f32 %v4513_v26, 0.0  ;;  %v453_v33 = vmax.f32 %v4516_v27, 0.0  ;;  %v417_v34 = vmax.f32 %v4415_v8, %v384_v32  ;;  %v416_v35 = vmax.f32 %v4413_v7, %v382_v4 }
 0x1f7   :  { %v479_v38 = vadd.f32 %v478_v28, %v477_v29 }
 0x1f8   :  { %v480_v39 = vsel %vm458_vm1, %v453_v33, 0.0  ;;  %v4529_v40 = vadd.f32 %v4428_v11, %v417_v34  ;;  %v4532_v41 = vadd.f32 %v4428_v11, %v416_v35  ;;  %v482_v7 = vsel %vm458_vm1, %v454_v3, 0.0 }
 0x1f9   :  { %v481_v44 = vadd.f32 %v480_v39, %v479_v38  ;;  %v386_v45 = vpop.permute.xlu1 %385 }
 0x1fa   :  { %v456_v8 = vmax.f32 %v4529_v40, 0.0  ;;  %v455_v47 = vmax.f32 %v4532_v41, 0.0  ;;  %v418_v50 = vmax.f32 %v4421_v10, %v386_v45 }
 0x1fb   :  { %v483_v51 = vadd.f32 %v482_v7, %v481_v44 }
 0x1fc   :  { %v484_v52 = vsel %vm458_vm1, %v455_v47, 0.0  ;;  %v4545_v53 = vadd.f32 %v4428_v11, %v418_v50  ;;  %v486_v57 = vsel %vm458_vm1, %v456_v8, 0.0 }
 0x1fd   :  { %v485_v56 = vadd.f32 %v484_v52, %v483_v51 }
 0x1fe   :  { %v457_v58 = vmax.f32 %v4545_v53, 0.0 }
 0x1ff   :  { %v487_v60 = vadd.f32 %v486_v57, %v485_v56 }
 0x200   :  { %v488_v62 = vsel %vm458_vm1, %v457_v58, 0.0 }
 0x201   :  { %v489_v1 = vadd.f32 %v488_v62, %v487_v60 }
 0x203   :  { %v490_v2 = vrot.slane %v489_v1, 4 }
 0x205   :  { %v491_v10 = vadd.f32 %v490_v2, %v489_v1 }
 0x207   :  { %v492_v5 = vrot.slane %v491_v10, 2 }
 0x209   :  { %v493_v12 = vadd.f32 %v492_v5, %v491_v10 }
 0x20b   :  { %v494_v13 = vrot.slane %v493_v12, 1 }
 0x20d   :  { %v495_v15 = vadd.f32 %v494_v13, %v493_v12 }
 0x20f   :  { %v497_v0 = vmul.f32 0.0078125, %v495_v15 }
 0x211   :  { %v4554_v11 = vsub.f32 %v442_v19, %v497_v0  ;;  %v4558_v17 = vsub.f32 %v443_v25, %v497_v0  ;;  %v4562_v18 = vsub.f32 %v444_v24, %v497_v0  ;;  %v4566_v22 = vsub.f32 %v445_v37, %v497_v0 }
 0x212   :  { %v4574_v19 = vsub.f32 %v446_v36, %v497_v0  ;;  %v4580_v20 = vsub.f32 %v447_v49, %v497_v0  ;;  %v4588_v30 = vsub.f32 %v448_v48, %v497_v0  ;;  %v4595_v49 = vsub.f32 %v449_v61, %v497_v0 }
 0x213   :  { %v514_v23 = vmul.f32 %v4554_v11, %v4554_v11  ;;  %v515_v14 = vmul.f32 %v4558_v17, %v4558_v17  ;;  %v516_v21 = vmul.f32 %v4562_v18, %v4562_v18  ;;  %v517_v24 = vmul.f32 %v4566_v22, %v4566_v22 }
 0x214   :  { %v518_v36 = vmul.f32 %v4574_v19, %v4574_v19  ;;  %v519_v29 = vmul.f32 %v4580_v20, %v4580_v20  ;;  %v4602_v42 = vsub.f32 %v450_v59, %v497_v0  ;;  %v520_v48 = vmul.f32 %v4588_v30, %v4588_v30 }
 0x215   :  { %v530_v25 = vsel %vm458_vm1, %v514_v23, 0.0  ;;  %v531_v31 = vsel %vm458_vm1, %v515_v14, 0.0  ;;  %v533_v28 = vsel %vm458_vm1, %v516_v21, 0.0  ;;  %v535_v32 = vsel %vm458_vm1, %v517_v24, 0.0 }
 0x216   :  { %v532_v37 = vadd.f32 %v531_v31, %v530_v25  ;;  %v537_v34 = vsel %vm458_vm1, %v518_v36, 0.0  ;;  %v4609_v55 = vsub.f32 %v451_v16, %v497_v0  ;;  %v521_v61 = vmul.f32 %v4595_v49, %v4595_v49 }
 0x217   :  { %v539_v38 = vsel %vm458_vm1, %v519_v29, 0.0  ;;  %v4616_v54 = vsub.f32 %v452_v63, %v497_v0  ;;  %v522_v59 = vmul.f32 %v4602_v42, %v4602_v42  ;;  %v541_v41 = vsel %vm458_vm1, %v520_v48, 0.0 }
 0x218   :  { %v534_v43 = vadd.f32 %v533_v28, %v532_v37  ;;  %v4623_v9 = vsub.f32 %v453_v33, %v497_v0  ;;  %v523_v16 = vmul.f32 %v4609_v55, %v4609_v55  ;;  %v543_v45 = vsel %vm458_vm1, %v521_v61, 0.0  ;;  %v3310_v28 = vld [vmem:[%s5413_s28] ss:$0 sm:$0xff]  ;;  %s5419_s28 = sld [smem:[#allocation13_spill]] }
 0x219   :  { %v4630_v6 = vsub.f32 %v454_v3, %v497_v0  ;;  %v524_v63 = vmul.f32 %v4616_v54, %v4616_v54  ;;  %v545_v7 = vsel %vm458_vm1, %v522_v59, 0.0  ;;  %v4635_v51 = vsub.f32 %v455_v47, %v497_v0 }
 0x21a   :  { %v536_v4 = vadd.f32 %v535_v32, %v534_v43  ;;  %v525_v27 = vmul.f32 %v4623_v9, %v4623_v9  ;;  %v547_v33 = vsel %vm458_vm1, %v523_v16, 0.0  ;;  %v4642_v53 = vsub.f32 %v456_v8, %v497_v0 }
 0x21b   :  { %v526_v26 = vmul.f32 %v4630_v6, %v4630_v6  ;;  %v549_v3 = vsel %vm458_vm1, %v524_v63, 0.0  ;;  %v4647_v57 = vsub.f32 %v457_v58, %v497_v0  ;;  %v527_v47 = vmul.f32 %v4635_v51, %v4635_v51 }
 0x21c   :  { %v538_v35 = vadd.f32 %v537_v34, %v536_v4  ;;  %v551_v60 = vsel %vm458_vm1, %v525_v27, 0.0  ;;  %v528_v1 = vmul.f32 %v4642_v53, %v4642_v53  ;;  %v4669_v4 = vld [vmem:[%s5414_s3] ss:$0 sm:$0xff]  ;;  %s5420_s3 = sld [smem:[#allocation14_spill]] }
 0x21d   :  { %v553_v40 = vsel %vm458_vm1, %v526_v26, 0.0  ;;  %v529_v2 = vmul.f32 %v4647_v57, %v4647_v57  ;;  %v555_v10 = vsel %vm458_vm1, %v527_v47, 0.0 }
 0x21e   :  { %v540_v39 = vadd.f32 %v539_v38, %v538_v35  ;;  %v557_v58 = vsel %vm458_vm1, %v528_v1, 0.0 }
 0x21f   :  { %v559_v13 = vsel %vm458_vm1, %v529_v2, 0.0 }
 0x220   :  { %v542_v44 = vadd.f32 %v541_v41, %v540_v39 }
 0x222   :  { %v544_v46 = vadd.f32 %v543_v45, %v542_v44 }
 0x224   :  { %v546_v50 = vadd.f32 %v545_v7, %v544_v46 }
 0x226   :  { %v548_v52 = vadd.f32 %v547_v33, %v546_v50 }
 0x228   :  { %v550_v56 = vadd.f32 %v549_v3, %v548_v52 }
 0x22a   :  { %v552_v62 = vadd.f32 %v551_v60, %v550_v56 }
 0x22c   :  { %v554_v8 = vadd.f32 %v553_v40, %v552_v62 }
 0x22e   :  { %v556_v5 = vadd.f32 %v555_v10, %v554_v8 }
 0x230   :  { %v558_v12 = vadd.f32 %v557_v58, %v556_v5 }
 0x232   :  { %v560_v15 = vadd.f32 %v559_v13, %v558_v12 }
 0x234   :  { %v561_v0 = vrot.slane %v560_v15, 4 }
 0x236   :  { %v562_v23 = vadd.f32 %v561_v0, %v560_v15 }
 0x238   :  { %v563_v14 = vrot.slane %v562_v23, 2 }
 0x23a   :  { %v564_v21 = vadd.f32 %v563_v14, %v562_v23 }
 0x23c   :  { %v565_v24 = vrot.slane %v564_v21, 1 }
 0x23e   :  { %v566_v25 = vadd.f32 %v565_v24, %v564_v21  ;;  %v633_v21 = vld [vmem:[%s5412_s10 + $0x8] sm:$0xff]  ;;  %v634_v24 = vld [vmem:[%s5412_s10 + $0x10] sm:$0xff] }
 0x240   :  { %v567_v31 = vmul.f32 0.0078125, %v566_v25  ;;  %v4107_v25 = vld [vmem:[%s5415_s30 + $0x8] sm:$0xff]  }
 0x241   :  { %3778 = vmatprep.subr.bf16.mxu0 %v4107_v25 }
 0x242   :  { %v568_v37 = vadd.f32 1e-05, %v567_v31  ;;  %v635_v31 = vld [vmem:[%s5412_s10 + $0x18] sm:$0xff]  ;;  %3779 = vmatpush3.bf16.msra.mxu0 %v4107_v25 }
 0x244   :  { %4145 = vrsqrt.f32 %v568_v37  ;;  %v636_v37 = vld [vmem:[%s5412_s10 + $0x20] sm:$0xff] }
 0x24e   :  { %v4146_v36 = vpop.eup %4145 }
 0x24f   :  { %v570_v43 = vmul.f32 %v4146_v36, %v4554_v11  ;;  %v571_v29 = vmul.f32 %v4146_v36, %v4558_v17  ;;  %v572_v32 = vmul.f32 %v4146_v36, %v4562_v18  ;;  %v573_v48 = vmul.f32 %v4146_v36, %v4566_v22 }
 0x250   :  { %v574_v34 = vmul.f32 %v4146_v36, %v4574_v19  ;;  %v575_v35 = vmul.f32 %v4146_v36, %v4580_v20  ;;  %v576_v17 = vmul.f32 %v4146_v36, %v4588_v30  ;;  %v577_v18 = vmul.f32 %v4146_v36, %v4595_v49 }
 0x251   :  { %v593_v61 = vmul.f32 %v3310_v28, %v570_v43  ;;  %v594_v38 = vmul.f32 %v3310_v28, %v571_v29  ;;  %v595_v39 = vmul.f32 %v3310_v28, %v572_v32  ;;  %v596_v59 = vmul.f32 %v3310_v28, %v573_v48  ;;  %v639_v43 = vld [vmem:[%s5412_s10 + $0x38] sm:$0xff]  ;;  %v640_v29 = vld [vmem:[%s5412_s10 + $0x40] sm:$0xff]  ;;  %v641_v32 = vld [vmem:[%s5412_s10 + $0x48] sm:$0xff] }
 0x252   :  { %v597_v11 = vmul.f32 %v3310_v28, %v574_v34  ;;  %v598_v22 = vmul.f32 %v3310_v28, %v575_v35  ;;  %v599_v46 = vmul.f32 %v3310_v28, %v576_v17  ;;  %v600_v63 = vmul.f32 %v3310_v28, %v577_v18  ;;  %v643_v48 = vld [vmem:[%s5412_s10 + $0x58] sm:$0xff]  ;;  %v644_v34 = vld [vmem:[%s5412_s10 + $0x60] sm:$0xff]  ;;  %v645_v35 = vld [vmem:[%s5412_s10 + $0x68] sm:$0xff] }
 0x253   :  { %v616_v41 = vadd.f32 %v4669_v4, %v593_v61  ;;  %v617_v44 = vadd.f32 %v4669_v4, %v594_v38  ;;  %v618_v16 = vadd.f32 %v4669_v4, %v595_v39  ;;  %v619_v19 = vadd.f32 %v4669_v4, %v596_v59  ;;  %v646_v61 = vld [vmem:[%s5412_s10 + $0x70] sm:$0xff]  ;;  %v647_v38 = vld [vmem:[%s5412_s10 + $0x78] sm:$0xff]  ;;  %v648_v39 = vld [vmem:[%s5412_s10 + $0x80] sm:$0xff] }
 0x254   :  { %v620_v20 = vadd.f32 %v4669_v4, %v597_v11  ;;  %v621_v30 = vadd.f32 %v4669_v4, %v598_v22  ;;  %v578_v49 = vmul.f32 %v4146_v36, %v4602_v42  ;;  %v579_v50 = vmul.f32 %v4146_v36, %v4609_v55  ;;  %v649_v59 = vld [vmem:[%s5412_s10 + $0x88] sm:$0xff]  ;;  %v650_v11 = vld [vmem:[%s5412_s10 + $0x90] sm:$0xff]  ;;  %v651_v17 = vld [vmem:[%s5412_s10 + $0x98] sm:$0xff] }
 0x255   :  { %v3926_v45 = vpack.c.bf16 %v617_v44, %v616_v41  ;;  %v3930_v7 = vpack.c.bf16 %v619_v19, %v618_v16  ;;  %v622_v27 = vadd.f32 %v4669_v4, %v599_v46  ;;  %v623_v33 = vadd.f32 %v4669_v4, %v600_v63  ;;  %v652_v18 = vld [vmem:[%s5412_s10 + $0xa0] sm:$0xff]  ;;  %v653_v41 = vld [vmem:[%s5412_s10 + $0xa8] sm:$0xff]  ;;  %v654_v44 = vld [vmem:[%s5412_s10 + $0xb0] sm:$0xff] }
 0x256   :  { %v580_v52 = vmul.f32 %v4146_v36, %v4616_v54  ;;  %v3934_v26 = vpack.c.bf16 %v621_v30, %v620_v20  ;;  %v601_v3 = vmul.f32 %v3310_v28, %v578_v49  ;;  %v602_v56 = vmul.f32 %v3310_v28, %v579_v50  ;;  %v655_v16 = vld [vmem:[%s5412_s10 + $0xb8] sm:$0xff]  ;;  %v656_v22 = vld [vmem:[%s5412_s10 + $0xc0] sm:$0xff]  ;;  %v657_v19 = vld [vmem:[%s5412_s10 + $0xc8] sm:$0xff] }
 0x257   :  { %3927 = vmatprep.subr.bf16.mxu1 %v3926_v45  ;;  %v581_v47 = vmul.f32 %v4146_v36, %v4623_v9  ;;  %v3938_v60 = vpack.c.bf16 %v623_v33, %v622_v27  ;;  %v582_v42 = vmul.f32 %v4146_v36, %v4630_v6  ;;  %v583_v8 = vmul.f32 %v4146_v36, %v4635_v51  ;;  %v659_v20 = vld [vmem:[%s5412_s10 + $0xd8] sm:$0xff]  ;;  %v660_v46 = vld [vmem:[%s5412_s10 + $0xe0] sm:$0xff]  ;;  %v661_v63 = vld [vmem:[%s5412_s10 + $0xe8] sm:$0xff] }
 0x258   :  { %3929 = vmatpush3.bf16.msra.mxu1 %v3926_v45  ;;  %v603_v62 = vmul.f32 %v3310_v28, %v580_v52  ;;  %v624_v55 = vadd.f32 %v4669_v4, %v601_v3  ;;  %v625_v1 = vadd.f32 %v4669_v4, %v602_v56  ;;  %v585_v54 = vmul.f32 %v4146_v36, %v4647_v57  ;;  %v658_v45 = vld [vmem:[%s5412_s10 + $0xd0] sm:$0xff]  ;;  %v663_v30 = vld [vmem:[%s5412_s10 + $0xf8] sm:$0xff]  ;;  %v664_v49 = vld [vmem:[%s5412_s10 + $0x100] sm:$0xff] }
 0x259   :  { %3931 = vmatprep.subr.bf16.mxu1 %v3930_v7  ;;  %v604_v40 = vmul.f32 %v3310_v28, %v581_v47  ;;  %v605_v2 = vmul.f32 %v3310_v28, %v582_v42  ;;  %v584_v9 = vmul.f32 %v4146_v36, %v4642_v53  ;;  %v606_v6 = vmul.f32 %v3310_v28, %v583_v8  ;;  %v637_v36 = vld [vmem:[%s5412_s10 + $0x28] sm:$0xff]  ;;  %v666_v27 = vld [vmem:[%s5412_s10 + $0x110] sm:$0xff]  ;;  %v667_v33 = vld [vmem:[%s5412_s10 + $0x118] sm:$0xff] }
 0x25a   :  { %v3942_v10 = vpack.c.bf16 %v625_v1, %v624_v55  ;;  %v626_v5 = vadd.f32 %v4669_v4, %v603_v62  ;;  %v608_v12 = vmul.f32 %v3310_v28, %v585_v54  ;;  %v665_v50 = vld [vmem:[%s5412_s10 + $0x108] sm:$0xff]  ;;  %v668_v52 = vld [vmem:[%s5412_s10 + $0x120] sm:$0xff]  ;;  %v670_v3 = vld [vmem:[%s5412_s10 + $0x130] sm:$0xff] }
 0x25b   :  { %v627_v58 = vadd.f32 %v4669_v4, %v604_v40  ;;  %v628_v15 = vadd.f32 %v4669_v4, %v605_v2  ;;  %v629_v51 = vadd.f32 %v4669_v4, %v606_v6  ;;  %v607_v0 = vmul.f32 %v3310_v28, %v584_v9  ;;  %v638_v28 = vld [vmem:[%s5412_s10 + $0x30] sm:$0xff]  ;;  %v671_v56 = vld [vmem:[%s5412_s10 + $0x138] sm:$0xff]  ;;  %v672_v47 = vld [vmem:[%s5412_s10 + $0x140] sm:$0xff] }
 0x25c   :  { %3933 = vmatpush3.bf16.msra.mxu1 %v3930_v7  ;;  %v631_v23 = vadd.f32 %v4669_v4, %v608_v12  ;;  %v662_v7 = vld [vmem:[%s5412_s10 + $0xf0] sm:$0xff]  ;;  %v675_v42 = vld [vmem:[%s5412_s10 + $0x158] sm:$0xff]  ;;  %v676_v55 = vld [vmem:[%s5412_s10 + $0x160] sm:$0xff] }
 0x25d   :  { %3935 = vmatprep.subr.bf16.mxu1 %v3934_v26  ;;  %v3946_v13 = vpack.c.bf16 %v627_v58, %v626_v5  ;;  %v3950_v57 = vpack.c.bf16 %v629_v51, %v628_v15  ;;  %v630_v53 = vadd.f32 %v4669_v4, %v607_v0  ;;  %v642_v4 = vld [vmem:[%s5412_s10 + $0x50] sm:$0xff]  ;;  %v677_v1 = vld [vmem:[%s5412_s10 + $0x168] sm:$0xff]  ;;  %v679_v8 = vld [vmem:[%s5412_s10 + $0x178] sm:$0xff] }
 0x25e   :  { %v674_v62 = vld [vmem:[%s5412_s10 + $0x150] sm:$0xff]  ;;  %v680_v54 = vld [vmem:[%s5412_s10 + $0x180] sm:$0xff]  ;;  %v681_v2 = vld [vmem:[%s5412_s10 + $0x188] sm:$0xff] }
 0x25f   :  { %v3954_v14 = vpack.c.bf16 %v631_v23, %v630_v53  ;;  %v678_v40 = vld [vmem:[%s5412_s10 + $0x170] sm:$0xff]  ;;  %v684_v5 = vld [vmem:[%s5412_s10 + $0x1a0] sm:$0xff]  ;;  %v685_v6 = vld [vmem:[%s5412_s10 + $0x1a8] sm:$0xff] }
 0x260   :  { %3937 = vmatpush3.bf16.msra.mxu1 %v3934_v26  ;;  %v669_v26 = vld [vmem:[%s5412_s10 + $0x128] sm:$0xff]  ;;  %v682_v9 = vld [vmem:[%s5412_s10 + $0x190] sm:$0xff]  ;;  %v4108_v58 = vld [vmem:[%s5415_s30] sm:$0xff]  }
 0x261   :  { %3939 = vmatprep.subr.bf16.mxu1 %v3938_v60  ;;  %v686_v12 = vld [vmem:[%s5412_s10 + $0x1b0] sm:$0xff]  ;;  %3784 = vmatprep.subr.bf16.mxu0 %v4108_v58  ;;  %v688_v15 = vld [vmem:[%s5412_s10 + $0x1c0] sm:$0xff]  ;;  %v689_v51 = vld [vmem:[%s5412_s10 + $0x1c8] sm:$0xff] }
 0x262   :  { %v690_v0 = vld [vmem:[%s5412_s10 + $0x1d0] sm:$0xff]  ;;  %v692_v53 = vld [vmem:[%s5412_s10 + $0x1e0] sm:$0xff]  ;;  %v693_v23 = vld [vmem:[%s5412_s10 + $0x1e8] sm:$0xff] }
 0x264   :  { %3941 = vmatpush3.bf16.msra.mxu1 %v3938_v60  ;;  %v673_v60 = vld [vmem:[%s5412_s10 + $0x148] sm:$0xff] }
 0x265   :  { %3943 = vmatprep.subr.bf16.mxu1 %v3942_v10 }
 0x268   :  { %3945 = vmatpush3.bf16.msra.mxu1 %v3942_v10  ;;  %v683_v10 = vld [vmem:[%s5412_s10 + $0x198] sm:$0xff] }
 0x269   :  { %3947 = vmatprep.subr.bf16.mxu1 %v3946_v13 }
 0x26c   :  { %3949 = vmatpush3.bf16.msra.mxu1 %v3946_v13  ;;  %v687_v13 = vld [vmem:[%s5412_s10 + $0x1b8] sm:$0xff] }
 0x26d   :  { %3951 = vmatprep.subr.bf16.mxu1 %v3950_v57 }
 0x270   :  { %3953 = vmatpush3.bf16.msra.mxu1 %v3950_v57  ;;  %v691_v57 = vld [vmem:[%s5412_s10 + $0x1d8] sm:$0xff] }
 0x271   :  { %3955 = vmatprep.subr.bf16.mxu1 %v3954_v14 }
 0x274   :  { %3957 = vmatpush3.bf16.msra.mxu1 %v3954_v14  ;;  %v694_v14 = vld [vmem:[%s5412_s10 + $0x1f0] sm:$0xff] }
 0x277   :  { %3683 = vmatmul.mubr.f32.vlgmr.msra.gmra.mrb[0].mxu1 %v633_v21  ;;  %v695_v21 = vld [vmem:[%s5412_s10 + $0x1f8] sm:$0xff] }
 0x278   :  { %3685 = vmatprep.mubr.f32.mxu1 %v634_v24 }
 0x27b   :  { %3686 = vmatmul.mubr.f32.gmra.mrb[2].mxu1 %v635_v31 }
 0x27c   :  { %3688 = vmatprep.mubr.f32.mxu1 %v636_v37 }
 0x27f   :  { %3689 = vmatmul.mubr.f32.gmra.mrb[4].mxu1 %v637_v36 }
 0x280   :  { %3691 = vmatprep.mubr.f32.mxu1 %v638_v28 }
 0x283   :  { %3692 = vmatmul.mubr.f32.gmra.mrb[6].mxu1 %v639_v43 }
 0x284   :  { %3694 = vmatprep.mubr.f32.mxu1 %v640_v29 }
 0x287   :  { %3695 = vmatmul.mubr.f32.gmra.mrb[8].mxu1 %v641_v32 }
 0x288   :  { %3697 = vmatprep.mubr.f32.mxu1 %v642_v4 }
 0x28b   :  { %3698 = vmatmul.mubr.f32.gmra.mrb[10].mxu1 %v643_v48 }
 0x28c   :  { %3700 = vmatprep.mubr.f32.mxu1 %v644_v34 }
 0x28f   :  { %3701 = vmatmul.mubr.f32.gmra.mrb[12].mxu1 %v645_v35  ;;  %v4109_v35 = vld [vmem:[%s5415_s30 + $0x10] sm:$0xff]  }
 0x290   :  { %3703 = vmatprep.mubr.f32.mxu1 %v646_v61 }
 0x293   :  { %3704 = vmatmul.mubr.f32.gmra.mrb[14].mxu1 %v647_v38 }
 0x294   :  { %3706 = vmatprep.mubr.f32.mxu1 %v648_v39 }
 0x297   :  { %3707 = vmatmul.mubr.f32.gmra.mrb[16].mxu1 %v649_v59 }
 0x298   :  { %3709 = vmatprep.mubr.f32.mxu1 %v650_v11 }
 0x29b   :  { %3710 = vmatmul.mubr.f32.gmra.mrb[18].mxu1 %v651_v17 }
 0x29c   :  { %3712 = vmatprep.mubr.f32.mxu1 %v652_v18 }
 0x29f   :  { %3713 = vmatmul.mubr.f32.gmra.mrb[20].mxu1 %v653_v41 }
 0x2a0   :  { %3715 = vmatprep.mubr.f32.mxu1 %v654_v44  ;;  %v4110_v44 = vld [vmem:[%s5415_s30 + $0x18] sm:$0xff]  }
 0x2a3   :  { %3716 = vmatmul.mubr.f32.gmra.mrb[22].mxu1 %v655_v16 }
 0x2a4   :  { %3718 = vmatprep.mubr.f32.mxu1 %v656_v22 }
 0x2a7   :  { %3719 = vmatmul.mubr.f32.gmra.mrb[24].mxu1 %v657_v19 }
 0x2a8   :  { %3721 = vmatprep.mubr.f32.mxu1 %v658_v45 }
 0x2ab   :  { %3722 = vmatmul.mubr.f32.gmra.mrb[26].mxu1 %v659_v20 }
 0x2ac   :  { %3724 = vmatprep.mubr.f32.mxu1 %v660_v46 }
 0x2af   :  { %3725 = vmatmul.mubr.f32.gmra.mrb[28].mxu1 %v661_v63 }
 0x2b0   :  { %3727 = vmatprep.mubr.f32.mxu1 %v662_v7 }
 0x2b3   :  { %3728 = vmatmul.mubr.f32.gmra.mrb[30].mxu1 %v663_v30 }
 0x2b4   :  { %3730 = vmatprep.mubr.f32.mxu1 %v664_v49  ;;  %v4111_v49 = vld [vmem:[%s5415_s30 + $0x20] sm:$0xff]  }
 0x2b7   :  { %3731 = vmatmul.mubr.f32.gmra.mrb[32].mxu1 %v665_v50 }
 0x2b8   :  { %3733 = vmatprep.mubr.f32.mxu1 %v666_v27 }
 0x2bb   :  { %3734 = vmatmul.mubr.f32.gmra.mrb[34].mxu1 %v667_v33 }
 0x2bc   :  { %3736 = vmatprep.mubr.f32.mxu1 %v668_v52 }
 0x2bf   :  { %3737 = vmatmul.mubr.f32.gmra.mrb[36].mxu1 %v669_v26 }
 0x2c0   :  { %3739 = vmatprep.mubr.f32.mxu1 %v670_v3 }
 0x2c3   :  { %3740 = vmatmul.mubr.f32.gmra.mrb[38].mxu1 %v671_v56 }
 0x2c4   :  { %3742 = vmatprep.mubr.f32.mxu1 %v672_v47 }
 0x2c7   :  { %3743 = vmatmul.mubr.f32.gmra.mrb[40].mxu1 %v673_v60 }
 0x2c8   :  { %3745 = vmatprep.mubr.f32.mxu1 %v674_v62  ;;  %v4112_v62 = vld [vmem:[%s5415_s30 + $0x28] sm:$0xff]  }
 0x2cb   :  { %3746 = vmatmul.mubr.f32.gmra.mrb[42].mxu1 %v675_v42 }
 0x2cc   :  { %3748 = vmatprep.mubr.f32.mxu1 %v676_v55 }
 0x2cf   :  { %3749 = vmatmul.mubr.f32.gmra.mrb[44].mxu1 %v677_v1 }
 0x2d0   :  { %3751 = vmatprep.mubr.f32.mxu1 %v678_v40 }
 0x2d3   :  { %3752 = vmatmul.mubr.f32.gmra.mrb[46].mxu1 %v679_v8 }
 0x2d4   :  { %3754 = vmatprep.mubr.f32.mxu1 %v680_v54 }
 0x2d7   :  { %3755 = vmatmul.mubr.f32.gmra.mrb[48].mxu1 %v681_v2 }
 0x2d8   :  { %3757 = vmatprep.mubr.f32.mxu1 %v682_v9 }
 0x2db   :  { %3758 = vmatmul.mubr.f32.gmra.mrb[50].mxu1 %v683_v10 }
 0x2dc   :  { %3760 = vmatprep.mubr.f32.mxu1 %v684_v5  ;;  %v4113_v5 = vld [vmem:[%s5415_s30 + $0x30] sm:$0xff]  }
 0x2df   :  { %3761 = vmatmul.mubr.f32.gmra.mrb[52].mxu1 %v685_v6 }
 0x2e0   :  { %3763 = vmatprep.mubr.f32.mxu1 %v686_v12 }
 0x2e3   :  { %3764 = vmatmul.mubr.f32.gmra.mrb[54].mxu1 %v687_v13 }
 0x2e4   :  { %3766 = vmatprep.mubr.f32.mxu1 %v688_v15 }
 0x2e7   :  { %3767 = vmatmul.mubr.f32.gmra.mrb[56].mxu1 %v689_v51 }
 0x2e8   :  { %3769 = vmatprep.mubr.f32.mxu1 %v690_v0 }
 0x2eb   :  { %3770 = vmatmul.mubr.f32.gmra.mrb[58].mxu1 %v691_v57 }
 0x2ec   :  { %3772 = vmatprep.mubr.f32.mxu1 %v692_v53 }
 0x2ef   :  { %3773 = vmatmul.mubr.f32.gmra.mrb[60].mxu1 %v693_v23  ;;  %v4114_v23 = vld [vmem:[%s5415_s30 + $0x38] sm:$0xff]  }
 0x2f0   :  { %3775 = vmatprep.mubr.f32.mxu1 %v694_v14 }
 0x2f3   :  { %3776 = vmatmul.mubr.f32.gmra.mrb[62].mxu1 %v695_v21 }
 0x34a   :  { %v3684_v24 = vpop.f32.mrb[0].mxu1 }
 0x34b   :  { %v762_v25 = vpop.f32.mrb[1].mxu1 }
 0x34c   :  { %v1081_v31 = vpack.c.bf16 %v3684_v24, %v762_v25 }
 0x34e   :  { %v3687_v37 = vpop.f32.mrb[2].mxu1 }
 0x34f   :  { %v772_v36 = vpop.f32.mrb[3].mxu1 }
 0x350   :  { %v1082_v28 = vpack.c.bf16 %v3687_v37, %v772_v36 }
 0x352   :  { %v3690_v43 = vpop.f32.mrb[4].mxu1 }
 0x353   :  { %v782_v29 = vpop.f32.mrb[5].mxu1 }
 0x354   :  { %v1083_v32 = vpack.c.bf16 %v3690_v43, %v782_v29  ;;  %v4115_v29 = vld [vmem:[%s5415_s30 + $0x40] sm:$0xff]  }
 0x356   :  { %v3693_v4 = vpop.f32.mrb[6].mxu1  ;;  %3780 = vmatprep.mubr.msk.bf16.mxu0 %vm458_vm1, %v1083_v32 }
 0x357   :  { %v792_v48 = vpop.f32.mrb[7].mxu1 }
 0x358   :  { %v1084_v34 = vpack.c.bf16 %v3693_v4, %v792_v48 }
 0x35a   :  { %3781 = vmatmul.mubr.msk.bf16.vlgmr.msra.gmra.mrb[16].mxu0 %vm458_vm1, %v1084_v34  ;;  %v3696_v61 = vpop.f32.mrb[8].mxu1 }
 0x35b   :  { %3786 = vmatprep.mubr.msk.bf16.mxu0 %vm458_vm1, %v1081_v31  ;;  %3785 = vmatpush3.bf16.msra.mxu0 %v4108_v58  ;;  %v802_v38 = vpop.f32.mrb[9].mxu1 }
 0x35c   :  { %3790 = vmatprep.subr.bf16.mxu0 %v4109_v35  ;;  %v1085_v39 = vpack.c.bf16 %v3696_v61, %v802_v38 }
 0x35e   :  { %v3699_v59 = vpop.f32.mrb[10].mxu1 }
 0x35f   :  { %v812_v11 = vpop.f32.mrb[11].mxu1 }
 0x360   :  { %v1086_v17 = vpack.c.bf16 %v3699_v59, %v812_v11  ;;  %v4116_v11 = vld [vmem:[%s5415_s30 + $0x48] sm:$0xff]  }
 0x362   :  { %v3702_v18 = vpop.f32.mrb[12].mxu1 }
 0x363   :  { %v822_v41 = vpop.f32.mrb[13].mxu1 }
 0x364   :  { %v1087_v16 = vpack.c.bf16 %v3702_v18, %v822_v41 }
 0x366   :  { %3787 = vmatmul.mubr.msk.bf16.vlgmr.msra.gmra.mrb[16].mxu0 %vm458_vm1, %v1082_v28  ;;  %v3705_v22 = vpop.f32.mrb[14].mxu1 }
 0x367   :  { %3791 = vmatpush3.bf16.msra.mxu0 %v4109_v35  ;;  %3792 = vmatprep.mubr.msk.bf16.mxu0 %vm458_vm1, %v1085_v39  ;;  %v832_v19 = vpop.f32.mrb[15].mxu1 }
 0x368   :  { %3796 = vmatprep.subr.bf16.mxu0 %v4110_v44  ;;  %v1088_v45 = vpack.c.bf16 %v3705_v22, %v832_v19 }
 0x36a   :  { %v3708_v20 = vpop.f32.mrb[16].mxu1 }
 0x36b   :  { %v842_v46 = vpop.f32.mrb[17].mxu1 }
 0x36c   :  { %v1089_v63 = vpack.c.bf16 %v3708_v20, %v842_v46  ;;  %v4117_v46 = vld [vmem:[%s5415_s30 + $0x50] sm:$0xff]  }
 0x36e   :  { %v3711_v7 = vpop.f32.mrb[18].mxu1 }
 0x36f   :  { %v852_v30 = vpop.f32.mrb[19].mxu1 }
 0x370   :  { %v1090_v50 = vpack.c.bf16 %v3711_v7, %v852_v30 }
 0x372   :  { %3793 = vmatmul.mubr.msk.bf16.vlgmr.msra.gmra.mrb[16].mxu0 %vm458_vm1, %v1086_v17  ;;  %v3714_v27 = vpop.f32.mrb[20].mxu1 }
 0x373   :  { %3797 = vmatpush3.bf16.msra.mxu0 %v4110_v44  ;;  %3798 = vmatprep.mubr.msk.bf16.mxu0 %vm458_vm1, %v1087_v16  ;;  %v862_v33 = vpop.f32.mrb[21].mxu1 }
 0x374   :  { %3802 = vmatprep.subr.bf16.mxu0 %v4111_v49  ;;  %v1091_v52 = vpack.c.bf16 %v3714_v27, %v862_v33 }
 0x376   :  { %v3717_v26 = vpop.f32.mrb[22].mxu1 }
 0x377   :  { %v872_v3 = vpop.f32.mrb[23].mxu1 }
 0x378   :  { %v1092_v56 = vpack.c.bf16 %v3717_v26, %v872_v3  ;;  %v4118_v3 = vld [vmem:[%s5415_s30 + $0x58] sm:$0xff]  }
 0x37a   :  { %v3720_v47 = vpop.f32.mrb[24].mxu1 }
 0x37b   :  { %v882_v60 = vpop.f32.mrb[25].mxu1 }
 0x37c   :  { %v1093_v42 = vpack.c.bf16 %v3720_v47, %v882_v60 }
 0x37e   :  { %3799 = vmatmul.mubr.msk.bf16.vlgmr.msra.gmra.mrb[16].mxu0 %vm458_vm1, %v1088_v45  ;;  %v3723_v55 = vpop.f32.mrb[26].mxu1 }
 0x37f   :  { %3803 = vmatpush3.bf16.msra.mxu0 %v4111_v49  ;;  %3804 = vmatprep.mubr.msk.bf16.mxu0 %vm458_vm1, %v1089_v63  ;;  %v892_v1 = vpop.f32.mrb[27].mxu1 }
 0x380   :  { %3808 = vmatprep.subr.bf16.mxu0 %v4112_v62  ;;  %v1094_v40 = vpack.c.bf16 %v3723_v55, %v892_v1  ;;  %v4120_v55 = vld [vmem:[%s5415_s30 + $0x68] sm:$0xff]   ;;  %v4121_v1 = vld [vmem:[%s5415_s30 + $0x70] sm:$0xff]  }
 0x382   :  { %v3726_v8 = vpop.f32.mrb[28].mxu1 }
 0x383   :  { %v902_v54 = vpop.f32.mrb[29].mxu1 }
 0x384   :  { %v1095_v2 = vpack.c.bf16 %v3726_v8, %v902_v54  ;;  %v4123_v8 = vld [vmem:[%s5416_s15] ss:$16 sps:$4 sm:$0xff]   ;;  %v4125_v54 = vld [vmem:[%s5416_s15 + $0x4] ss:$16 sps:$4 sm:$0xff]  }
 0x385   :  { %2354 = vmatprep.subr.bf16.mxu1 %v4125_v54 }
 0x386   :  { %v3729_v9 = vpop.f32.mrb[30].mxu1  ;;  %2355 = vmatpush1.bf16.msra.mxu1 %v4123_v8 }
 0x387   :  { %v912_v10 = vpop.f32.mrb[31].mxu1 }
 0x388   :  { %v1096_v58 = vpack.c.bf16 %v3729_v9, %v912_v10 }
 0x38a   :  { %3805 = vmatmul.mubr.msk.bf16.vlgmr.msra.gmra.mrb[16].mxu0 %vm458_vm1, %v1090_v50  ;;  %v3732_v6 = vpop.f32.mrb[32].mxu1 }
 0x38b   :  { %3809 = vmatpush3.bf16.msra.mxu0 %v4112_v62  ;;  %3810 = vmatprep.mubr.msk.bf16.mxu0 %vm458_vm1, %v1091_v52  ;;  %v922_v12 = vpop.f32.mrb[33].mxu1 }
 0x38c   :  { %3814 = vmatprep.subr.bf16.mxu0 %v4113_v5  ;;  %v1097_v13 = vpack.c.bf16 %v3732_v6, %v922_v12 }
 0x38e   :  { %v3735_v15 = vpop.f32.mrb[34].mxu1 }
 0x38f   :  { %v932_v51 = vpop.f32.mrb[35].mxu1 }
 0x390   :  { %v1098_v0 = vpack.c.bf16 %v3735_v15, %v932_v51 }
 0x392   :  { %v3738_v57 = vpop.f32.mrb[36].mxu1 }
 0x393   :  { %v942_v53 = vpop.f32.mrb[37].mxu1 }
 0x394   :  { %v1099_v14 = vpack.c.bf16 %v3738_v57, %v942_v53  ;;  %v4126_v53 = vld [vmem:[%s5416_s15 + $0x20] ss:$16 sps:$4 sm:$0xff]  }
 0x396   :  { %3811 = vmatmul.mubr.msk.bf16.vlgmr.msra.gmra.mrb[16].mxu0 %vm458_vm1, %v1092_v56  ;;  %v3741_v21 = vpop.f32.mrb[38].mxu1 }
 0x397   :  { %3815 = vmatpush3.bf16.msra.mxu0 %v4113_v5  ;;  %3816 = vmatprep.mubr.msk.bf16.mxu0 %vm458_vm1, %v1093_v42  ;;  %v952_v24 = vpop.f32.mrb[39].mxu1  ;;  %v4119_v42 = vld [vmem:[%s5415_s30 + $0x60] sm:$0xff]  }
 0x398   :  { %3820 = vmatprep.subr.bf16.mxu0 %v4114_v23  ;;  %v1100_v25 = vpack.c.bf16 %v3741_v21, %v952_v24  ;;  %v4131_v21 = vld [vmem:[%s5416_s15 + $0xc] ss:$16 sps:$4 sm:$0xff]  }
 0x399   :  { %v4134_v24 = vld [vmem:[%s5416_s15 + $0x2c] ss:$16 sps:$4 sm:$0xff]  }
 0x39a   :  { %v3744_v31 = vpop.f32.mrb[40].mxu1 }
 0x39b   :  { %v962_v37 = vpop.f32.mrb[41].mxu1 }
 0x39c   :  { %v1101_v36 = vpack.c.bf16 %v3744_v31, %v962_v37  ;;  %v4152_v31 = vmov 0   ;;  %v3360_v37 = vld [vmem:[%s5417_s12] ss:$0 sm:$0xff] }
 0x39d   :  { %2386 = vmatprep.mubr.bf16.mxu1 %v4152_v31 }
 0x39e   :  { %v3747_v28 = vpop.f32.mrb[42].mxu1 }
 0x39f   :  { %v972_v43 = vpop.f32.mrb[43].mxu1 }
 0x3a0   :  { %v1102_v32 = vpack.c.bf16 %v3747_v28, %v972_v43 }
 0x3a2   :  { %3817 = vmatmul.mubr.msk.bf16.vlgmr.msra.gmra.mrb[16].mxu0 %vm458_vm1, %v1094_v40  ;;  %v3750_v4 = vpop.f32.mrb[44].mxu1  ;;  %v4122_v40 = vld [vmem:[%s5415_s30 + $0x78] sm:$0xff]   ;;  %s4151_s30 = smov 64  }
 0x3a3   :  { %3821 = vmatpush3.bf16.msra.mxu0 %v4114_v23  ;;  %3822 = vmatprep.mubr.msk.bf16.mxu0 %vm458_vm1, %v1095_v2  ;;  %v982_v48 = vpop.f32.mrb[45].mxu1  ;;  %v4128_v23 = vld [vmem:[%s5416_s15 + $0x24] ss:$16 sps:$4 sm:$0xff]  }
 0x3a4   :  { %3826 = vmatprep.subr.bf16.mxu0 %v4115_v29  ;;  %v1103_v34 = vpack.c.bf16 %v3750_v4, %v982_v48  ;;  %2356 = vmatprep.subr.bf16.mxu1 %v4128_v23  ;;  %v3362_v23 = vld [vmem:[%s5419_s28] ss:$0 sm:$0xff] }
 0x3a5   :  { %2357 = vmatpush1.bf16.msra.mxu1 %v4126_v53 }
 0x3a6   :  { %v3753_v35 = vpop.f32.mrb[46].mxu1 }
 0x3a7   :  { %v992_v61 = vpop.f32.mrb[47].mxu1 }
 0x3a8   :  { %v1104_v38 = vpack.c.bf16 %v3753_v35, %v992_v61 }
 0x3aa   :  { %v3756_v39 = vpop.f32.mrb[48].mxu1 }
 0x3ab   :  { %v1002_v59 = vpop.f32.mrb[49].mxu1 }
 0x3ac   :  { %v1105_v17 = vpack.c.bf16 %v3756_v39, %v1002_v59 }
 0x3ae   :  { %3823 = vmatmul.mubr.msk.bf16.vlgmr.msra.gmra.mrb[16].mxu0 %vm458_vm1, %v1096_v58  ;;  %v3759_v18 = vpop.f32.mrb[50].mxu1 }
 0x3af   :  { %3827 = vmatpush3.bf16.msra.mxu0 %v4115_v29  ;;  %3828 = vmatprep.mubr.msk.bf16.mxu0 %vm458_vm1, %v1097_v13  ;;  %v1012_v41 = vpop.f32.mrb[51].mxu1 }
 0x3b0   :  { %3832 = vmatprep.subr.bf16.mxu0 %v4116_v11  ;;  %v1106_v44 = vpack.c.bf16 %v3759_v18, %v1012_v41 }
 0x3b2   :  { %v3762_v16 = vpop.f32.mrb[52].mxu1 }
 0x3b3   :  { %v1022_v22 = vpop.f32.mrb[53].mxu1 }
 0x3b4   :  { %v1107_v19 = vpack.c.bf16 %v3762_v16, %v1022_v22 }
 0x3b6   :  { %v3765_v45 = vpop.f32.mrb[54].mxu1 }
 0x3b7   :  { %v1032_v20 = vpop.f32.mrb[55].mxu1 }
 0x3b8   :  { %v1108_v63 = vpack.c.bf16 %v3765_v45, %v1032_v20 }
 0x3ba   :  { %3829 = vmatmul.mubr.msk.bf16.vlgmr.msra.gmra.mrb[16].mxu0 %vm458_vm1, %v1098_v0  ;;  %v3768_v7 = vpop.f32.mrb[56].mxu1 }
 0x3bb   :  { %3833 = vmatpush3.bf16.msra.mxu0 %v4116_v11  ;;  %3834 = vmatprep.mubr.msk.bf16.mxu0 %vm458_vm1, %v1099_v14  ;;  %v1042_v30 = vpop.f32.mrb[57].mxu1  ;;  %v4129_v14 = vld [vmem:[%s5416_s15 + $0x8] ss:$16 sps:$4 sm:$0xff]  }
 0x3bc   :  { %3838 = vmatprep.subr.bf16.mxu0 %v4117_v46  ;;  %v1109_v49 = vpack.c.bf16 %v3768_v7, %v1042_v30 }
 0x3be   :  { %v3771_v50 = vpop.f32.mrb[58].mxu1 }
 0x3bf   :  { %v1052_v27 = vpop.f32.mrb[59].mxu1 }
 0x3c0   :  { %v1110_v33 = vpack.c.bf16 %v3771_v50, %v1052_v27 }
 0x3c2   :  { %v3774_v52 = vpop.f32.mrb[60].mxu1 }
 0x3c3   :  { %v1062_v26 = vpop.f32.mrb[61].mxu1 }
 0x3c4   :  { %v1111_v56 = vpack.c.bf16 %v3774_v52, %v1062_v26 }
 0x3c6   :  { %3835 = vmatmul.mubr.msk.bf16.vlgmr.msra.gmra.mrb[16].mxu0 %vm458_vm1, %v1100_v25  ;;  %v3777_v47 = vpop.f32.mrb[62].mxu1  ;;  %v4132_v25 = vld [vmem:[%s5416_s15 + $0x28] ss:$16 sps:$4 sm:$0xff]  }
 0x3c7   :  { %3839 = vmatpush3.bf16.msra.mxu0 %v4117_v46  ;;  %3840 = vmatprep.mubr.msk.bf16.mxu0 %vm458_vm1, %v1101_v36  ;;  %v1072_v60 = vpop.f32.mrb[63].mxu1 }
 0x3c8   :  { %3844 = vmatprep.subr.bf16.mxu0 %v4118_v3  ;;  %v1112_v62 = vpack.c.bf16 %v3777_v47, %v1072_v60 }
 0x3d2   :  { %3841 = vmatmul.mubr.msk.bf16.vlgmr.msra.gmra.mrb[16].mxu0 %vm458_vm1, %v1102_v32 }
 0x3d3   :  { %3845 = vmatpush3.bf16.msra.mxu0 %v4118_v3  ;;  %3846 = vmatprep.mubr.msk.bf16.mxu0 %vm458_vm1, %v1103_v34 }
 0x3d4   :  { %3850 = vmatprep.subr.bf16.mxu0 %v4119_v42 }
 0x3de   :  { %3847 = vmatmul.mubr.msk.bf16.vlgmr.msra.gmra.mrb[16].mxu0 %vm458_vm1, %v1104_v38 }
 0x3df   :  { %3851 = vmatpush3.bf16.msra.mxu0 %v4119_v42  ;;  %3852 = vmatprep.mubr.msk.bf16.mxu0 %vm458_vm1, %v1105_v17 }
 0x3e0   :  { %3856 = vmatprep.subr.bf16.mxu0 %v4120_v55 }
 0x3ea   :  { %3853 = vmatmul.mubr.msk.bf16.vlgmr.msra.gmra.mrb[16].mxu0 %vm458_vm1, %v1106_v44 }
 0x3eb   :  { %3857 = vmatpush3.bf16.msra.mxu0 %v4120_v55  ;;  %3858 = vmatprep.mubr.msk.bf16.mxu0 %vm458_vm1, %v1107_v19 }
 0x3ec   :  { %3862 = vmatprep.subr.bf16.mxu0 %v4121_v1 }
 0x3f6   :  { %3859 = vmatmul.mubr.msk.bf16.vlgmr.msra.gmra.mrb[16].mxu0 %vm458_vm1, %v1108_v63 }
 0x3f7   :  { %3863 = vmatpush3.bf16.msra.mxu0 %v4121_v1  ;;  %3864 = vmatprep.mubr.msk.bf16.mxu0 %vm458_vm1, %v1109_v49 }
 0x3f8   :  { %3868 = vmatprep.subr.bf16.mxu0 %v4122_v40 }
 0x402   :  { %3865 = vmatmul.mubr.msk.bf16.vlgmr.msra.gmra.mrb[16].mxu0 %vm458_vm1, %v1110_v33 }
 0x403   :  { %3869 = vmatpush3.bf16.msra.mxu0 %v4122_v40  ;;  %3870 = vmatprep.mubr.msk.bf16.mxu0 %vm458_vm1, %v1111_v56 }
 0x404   :  { %2407 = vmatprep.subr.bf16.mxu0 %v4131_v21 }
 0x40e   :  { %3871 = vmatmul.mubr.msk.bf16.vlgmr.msra.gmra.mrb[16].mxu0 %vm458_vm1, %v1112_v62 }
 0x40f   :  { %2408 = vmatpush1.bf16.msra.mxu0 %v4129_v14  ;;  %2439 = vmatprep.mubr.bf16.mxu0 %v4152_v31 }
 0x410   :  { %2409 = vmatprep.subr.bf16.mxu0 %v4134_v24 }
 0x413   :  { %2410 = vmatpush1.bf16.msra.mxu0 %v4132_v25 }
 0x4e1   :  { %v3872_v2 = vpop.f32.mrb[16].mxu0 }
 0x4e2   :  { %v2158_v9 = vpop.f32.mrb[17].mxu0 }
 0x4e3   :  { %2181 = vrot.lane.b32.xlu0 %v2158_v9, %s4150_s0  ;;  %v3873_v10 = vpop.f32.mrb[18].mxu0 }
 0x4e4   :  { %v2161_v5 = vpop.f32.mrb[19].mxu0 }
 0x4e5   :  { %2183 = vrot.lane.b32.xlu1 %v2161_v5, %s4150_s0 }
 0x4e7   :  { %2185 = vrot.lane.b32.xlu0 %v3872_v2, %s4150_s0 }
 0x4e9   :  { %2187 = vrot.lane.b32.xlu1 %v3873_v10, %s4150_s0 }
 0x555   :  { %v2182_v58 = vpop.permute.xlu0 %2181 }
 0x556   :  { %v2193_v6 = vmax.f32 %v2158_v9, %v2182_v58 }
 0x557   :  { %v2184_v12 = vpop.permute.xlu1 %2183 }
 0x558   :  { %v2194_v13 = vmax.f32 %v2161_v5, %v2184_v12  ;;  %2201 = vrot.lane.b32.xlu0 %v2193_v6, %s4151_s30 }
 0x559   :  { %v2186_v15 = vpop.permute.xlu0 %2185 }
 0x55a   :  { %v2195_v51 = vmax.f32 %v3872_v2, %v2186_v15  ;;  %2203 = vrot.lane.b32.xlu1 %v2194_v13, %s4151_s30 }
 0x55b   :  { %v2188_v0 = vpop.permute.xlu1 %2187 }
 0x55c   :  { %v2196_v57 = vmax.f32 %v3873_v10, %v2188_v0  ;;  %2205 = vrot.lane.b32.xlu0 %v2195_v51, %s4151_s30  ;;  %v3361_v0 = vld [vmem:[%s5418_s7] ss:$0 sm:$0xff] }
 0x55e   :  { %2207 = vrot.lane.b32.xlu1 %v2196_v57, %s4151_s30 }
 0x5ca   :  { %v2202_v36 = vpop.permute.xlu0 %2201 }
 0x5cb   :  { %v2213_v28 = vmax.f32 %v2193_v6, %v2202_v36 }
 0x5cc   :  { %v2204_v43 = vpop.permute.xlu1 %2203 }
 0x5cd   :  { %v2224_v29 = vadd.f32 %v3360_v37, %v2213_v28  ;;  %v2214_v32 = vmax.f32 %v2194_v13, %v2204_v43 }
 0x5ce   :  { %v2206_v4 = vpop.permute.xlu0 %2205 }
 0x5cf   :  { %v2228_v48 = vmax.f32 %v2224_v29, 0.0  ;;  %v2225_v34 = vadd.f32 %v3360_v37, %v2214_v32  ;;  %v2215_v35 = vmax.f32 %v2195_v51, %v2206_v4 }
 0x5d0   :  { %v2208_v61 = vpop.permute.xlu1 %2207 }
 0x5d1   :  { %v2229_v38 = vmax.f32 %v2225_v34, 0.0  ;;  %v2226_v39 = vadd.f32 %v3360_v37, %v2215_v35  ;;  %v2216_v59 = vmax.f32 %v2196_v57, %v2208_v61  ;;  %v2233_v11 = vsel %vm2232_vm2, %v2228_v48, 0.0  ;;  %v2654_v35 = vld [vmem:[%s5420_s3 + $0x80] sm:$0xff]  ;;  %v2655_v61 = vld [vmem:[%s5420_s3 + $0x88] sm:$0xff] }
 0x5d2   :  { %v4153_v34 = vmov 0.0  }
 0x5d3   :  { %v2234_v17 = vsel %vm2232_vm2, %v2229_v38, 0.0  ;;  %v2230_v18 = vmax.f32 %v2226_v39, 0.0  ;;  %v2227_v41 = vadd.f32 %v3360_v37, %v2216_v59  ;;  %v2639_v39 = vld [vmem:[%s5420_s3 + $0x8] sm:$0xff]  ;;  %v2656_v59 = vld [vmem:[%s5420_s3 + $0x90] sm:$0xff] }
 0x5d4   :  { %v2235_v44 = vadd.f32 %v2234_v17, %v2233_v11  ;;  %v2657_v11 = vld [vmem:[%s5420_s3 + $0x98] sm:$0xff] }
 0x5d5   :  { %v2236_v16 = vsel %vm2232_vm2, %v2230_v18, 0.0  ;;  %v2231_v22 = vmax.f32 %v2227_v41, 0.0  ;;  %v2640_v41 = vld [vmem:[%s5420_s3 + $0x10] sm:$0xff] }
 0x5d6   :  { %v2237_v19 = vadd.f32 %v2236_v16, %v2235_v44  ;;  %v2641_v44 = vld [vmem:[%s5420_s3 + $0x18] sm:$0xff] }
 0x5d7   :  { %v2238_v45 = vsel %vm2232_vm2, %v2231_v22, 0.0  ;;  %v3980_v16 = vpack.c.bf16 %v2641_v44, %v2640_v41  ;;  %v2469_v44 = vld [vmem:[%s5375_s13 + $0x40] sm:$0xff] }
 0x5d8   :  { %v2239_v20 = vadd.f32 %v2238_v45, %v2237_v19  ;;  %v2659_v19 = vld [vmem:[%s5420_s3 + $0xa8] sm:$0xff] }
 0x5da   :  { %v2240_v46 = vrot.slane %v2239_v20, 4 }
 0x5dc   :  { %v2241_v63 = vadd.f32 %v2240_v46, %v2239_v20  ;;  %v2642_v20 = vld [vmem:[%s5420_s3 + $0x20] sm:$0xff]  ;;  %v2643_v46 = vld [vmem:[%s5420_s3 + $0x28] sm:$0xff] }
 0x5de   :  { %v2242_v7 = vrot.slane %v2241_v63, 2 }
 0x5e0   :  { %v2243_v30 = vadd.f32 %v2242_v7, %v2241_v63  ;;  %v2660_v63 = vld [vmem:[%s5420_s3 + $0xb0] sm:$0xff]  ;;  %v2661_v7 = vld [vmem:[%s5420_s3 + $0xb8] sm:$0xff] }
 0x5e2   :  { %v2244_v49 = vrot.slane %v2243_v30, 1 }
 0x5e4   :  { %v2245_v50 = vadd.f32 %v2244_v49, %v2243_v30  ;;  %v3984_v30 = vpack.c.bf16 %v2643_v46, %v2642_v20  ;;  %v3986_v49 = vpack.c.bf16 %v2661_v7, %v2660_v63  ;;  %v2473_v20 = vld [vmem:[%s5375_s13 + $0x60] sm:$0xff]  ;;  %v2475_v46 = vld [vmem:[%s5375_s13 + $0x70] sm:$0xff] }
 0x5e6   :  { %v2247_v27 = vmul.f32 0.03125, %v2245_v50  ;;  %v2644_v50 = vld [vmem:[%s5420_s3 + $0x30] sm:$0xff] }
 0x5e8   :  { %v2248_v33 = vsub.f32 %v2228_v48, %v2247_v27  ;;  %v2249_v52 = vsub.f32 %v2229_v38, %v2247_v27  ;;  %v2250_v26 = vsub.f32 %v2230_v18, %v2247_v27  ;;  %v2251_v3 = vsub.f32 %v2231_v22, %v2247_v27  ;;  %v2658_v22 = vld [vmem:[%s5420_s3 + $0xa0] sm:$0xff]  ;;  %v2645_v27 = vld [vmem:[%s5420_s3 + $0x38] sm:$0xff] }
 0x5e9   :  { %v3974_v38 = vpack.c.bf16 %v2655_v61, %v2654_v35  ;;  %v3978_v18 = vpack.c.bf16 %v2657_v11, %v2656_v59  ;;  %v3982_v45 = vpack.c.bf16 %v2659_v19, %v2658_v22 }
 0x5ea   :  { %v2252_v56 = vmul.f32 %v2248_v33, %v2248_v33  ;;  %v2253_v47 = vmul.f32 %v2249_v52, %v2249_v52  ;;  %v2254_v60 = vmul.f32 %v2250_v26, %v2250_v26  ;;  %v2255_v62 = vmul.f32 %v2251_v3, %v2251_v3 }
 0x5eb   :  { %3975 = vmatprep.subr.bf16.mxu0 %v3974_v38 }
 0x5ec   :  { %v2256_v42 = vsel %vm2232_vm2, %v2252_v56, 0.0  ;;  %v2257_v55 = vsel %vm2232_vm2, %v2253_v47, 0.0  ;;  %v2259_v40 = vsel %vm2232_vm2, %v2254_v60, 0.0  ;;  %v2261_v54 = vsel %vm2232_vm2, %v2255_v62, 0.0  ;;  %v2646_v56 = vld [vmem:[%s5420_s3 + $0x40] sm:$0xff]  ;;  %v2647_v47 = vld [vmem:[%s5420_s3 + $0x48] sm:$0xff] }
 0x5ed   :  { %v2258_v1 = vadd.f32 %v2257_v55, %v2256_v42  ;;  %v2664_v60 = vld [vmem:[%s5420_s3 + $0xd0] sm:$0xff]  ;;  %v2665_v62 = vld [vmem:[%s5420_s3 + $0xd8] sm:$0xff]  ;;  %v3992_v42 = vpack.c.bf16 %v2647_v47, %v2646_v56 }
 0x5ee   :  { %v3994_v55 = vpack.c.bf16 %v2665_v62, %v2664_v60 }
 0x5ef   :  { %v2260_v8 = vadd.f32 %v2259_v40, %v2258_v1  ;;  %v2648_v1 = vld [vmem:[%s5420_s3 + $0x50] sm:$0xff]  ;;  %v2649_v40 = vld [vmem:[%s5420_s3 + $0x58] sm:$0xff] }
 0x5f1   :  { %v2262_v2 = vadd.f32 %v2261_v54, %v2260_v8  ;;  %v2666_v8 = vld [vmem:[%s5420_s3 + $0xe0] sm:$0xff]  ;;  %v2667_v54 = vld [vmem:[%s5420_s3 + $0xe8] sm:$0xff] }
 0x5f3   :  { %v2263_v9 = vrot.slane %v2262_v2, 4 }
 0x5f5   :  { %v2264_v10 = vadd.f32 %v2263_v9, %v2262_v2  ;;  %v3996_v2 = vpack.c.bf16 %v2649_v40, %v2648_v1  ;;  %v3998_v9 = vpack.c.bf16 %v2667_v54, %v2666_v8 }
 0x5f7   :  { %v2265_v5 = vrot.slane %v2264_v10, 2 }
 0x5f9   :  { %v2266_v58 = vadd.f32 %v2265_v5, %v2264_v10  ;;  %v2650_v10 = vld [vmem:[%s5420_s3 + $0x60] sm:$0xff]  ;;  %v2651_v5 = vld [vmem:[%s5420_s3 + $0x68] sm:$0xff] }
 0x5fb   :  { %v2267_v6 = vrot.slane %v2266_v58, 1 }
 0x5fd   :  { %v2268_v12 = vadd.f32 %v2267_v6, %v2266_v58  ;;  %v2668_v58 = vld [vmem:[%s5420_s3 + $0xf0] sm:$0xff]  ;;  %v2669_v6 = vld [vmem:[%s5420_s3 + $0xf8] sm:$0xff] }
 0x5ff   :  { %v2269_v13 = vmul.f32 0.03125, %v2268_v12  ;;  %v4000_v12 = vpack.c.bf16 %v2651_v5, %v2650_v10  ;;  %v2686_v10 = vld [vmem:[%s5420_s3 + $0x180] sm:$0xff]  ;;  %v2687_v5 = vld [vmem:[%s5420_s3 + $0x188] sm:$0xff] }
 0x601   :  { %v2270_v15 = vadd.f32 1e-05, %v2269_v13  ;;  %v4002_v13 = vpack.c.bf16 %v2669_v6, %v2668_v58  ;;  %v4006_v58 = vpack.c.bf16 %v2687_v5, %v2686_v10  ;;  %v2670_v6 = vld [vmem:[%s5420_s3 + $0x100] sm:$0xff] }
 0x602   :  { %v3029_v10 = vld [vmem:[%s5380_s2] sm:$0x3] }
 0x603   :  { %4147 = vrsqrt.f32 %v2270_v15  ;;  %v2461_v15 = vld [vmem:[%s5375_s13] sm:$0xff]  ;;  %v3030_v5 = vpack.c.bf16 %v3029_v10, %v3029_v10 }
 0x60d   :  { %v4148_v51 = vpop.eup %4147 }
 0x60e   :  { %v2272_v57 = vmul.f32 %v4148_v51, %v2248_v33  ;;  %v2273_v53 = vmul.f32 %v4148_v51, %v2249_v52  ;;  %v2275_v14 = vmul.f32 %v4148_v51, %v2251_v3  ;;  %v2274_v25 = vmul.f32 %v4148_v51, %v2250_v26  ;;  %v2662_v33 = vld [vmem:[%s5420_s3 + $0xc0] sm:$0xff]  ;;  %v2663_v52 = vld [vmem:[%s5420_s3 + $0xc8] sm:$0xff]  ;;  %v2463_v51 = vld [vmem:[%s5375_s13 + $0x10] sm:$0xff] }
 0x60f   :  { %v3988_v26 = vpack.c.bf16 %v2645_v27, %v2644_v50  ;;  %v3990_v3 = vpack.c.bf16 %v2663_v52, %v2662_v33  ;;  %v2476_v50 = vld [vmem:[%s5375_s13 + $0x78] sm:$0xff] }
 0x610   :  { %v2283_v21 = vmul.f32 %v3361_v0, %v2272_v57  ;;  %v2284_v24 = vmul.f32 %v3361_v0, %v2273_v53  ;;  %v2286_v28 = vmul.f32 %v3361_v0, %v2275_v14  ;;  %v2285_v29 = vmul.f32 %v3361_v0, %v2274_v25  ;;  %v2462_v53 = vld [vmem:[%s5375_s13 + $0x8] sm:$0xff]  ;;  %v2467_v14 = vld [vmem:[%s5375_s13 + $0x30] sm:$0xff]  ;;  %v2464_v25 = vld [vmem:[%s5375_s13 + $0x18] sm:$0xff] }
 0x612   :  { %v2294_v37 = vadd.f32 %v3362_v23, %v2283_v21  ;;  %v2295_v36 = vadd.f32 %v3362_v23, %v2284_v24  ;;  %v2296_v32 = vadd.f32 %v3362_v23, %v2285_v29  ;;  %v2297_v4 = vadd.f32 %v3362_v23, %v2286_v28  ;;  %v2465_v23 = vld [vmem:[%s5375_s13 + $0x20] sm:$0xff] }
 0x614   :  { %v2298_v43 = vpack.c.bf16 %v2295_v36, %v2294_v37  ;;  %v2299_v48 = vpack.c.bf16 %v2297_v4, %v2296_v32  ;;  %v2466_v37 = vld [vmem:[%s5375_s13 + $0x28] sm:$0xff]  ;;  %v2468_v36 = vld [vmem:[%s5375_s13 + $0x38] sm:$0xff] }
 0x616   :  { %3371 = vmatmul.mubr.msk.bf16.vlgmr.msra.gmra.mrb[64].mxu1 %vm2232_vm2, %v2298_v43  ;;  %3373 = vmatmul.mubr.msk.bf16.vlgmr.msra.gmra.mrb[20].mxu0 %vm2232_vm2, %v2298_v43 }
 0x617   :  { %2396 = vmatprep.mubr.bf16.mxu1 %v4152_v31  ;;  %2449 = vmatprep.mubr.bf16.mxu0 %v4152_v31  ;;  %v2638_v31 = vld [vmem:[%s5420_s3] sm:$0xff] }
 0x618   :  { %v3976_v17 = vpack.c.bf16 %v2639_v39, %v2638_v31 }
 0x61a   :  { %3977 = vmatpush3.bf16.msra.mxu0 %v3976_v17 }
 0x61b   :  { %3979 = vmatprep.subr.bf16.mxu0 %v3978_v18 }
 0x61e   :  { %3372 = vmatmul.mubr.msk.bf16.gmra.mrb[68].mxu1 %vm2232_vm2, %v2299_v48  ;;  %3374 = vmatmul.mubr.msk.bf16.gmra.mrb[24].mxu0 %vm2232_vm2, %v2299_v48 }
 0x61f   :  { %2560 = vmatprep.mubr.f32.mxu1 %v4153_v34  ;;  %3981 = vmatpush3.bf16.msra.mxu0 %v3980_v16  ;;  %v2471_v16 = vld [vmem:[%s5375_s13 + $0x50] sm:$0xff] }
 0x620   :  { %3983 = vmatprep.subr.bf16.mxu0 %v3982_v45  ;;  %v2470_v45 = vld [vmem:[%s5375_s13 + $0x48] sm:$0xff] }
 0x623   :  { %3985 = vmatpush3.bf16.msra.mxu0 %v3984_v30  ;;  %v2472_v30 = vld [vmem:[%s5375_s13 + $0x58] sm:$0xff] }
 0x624   :  { %3987 = vmatprep.subr.bf16.mxu0 %v3986_v49  ;;  %v2474_v49 = vld [vmem:[%s5375_s13 + $0x68] sm:$0xff] }
 0x627   :  { %3989 = vmatpush3.bf16.msra.mxu0 %v3988_v26 }
 0x628   :  { %3991 = vmatprep.subr.bf16.mxu0 %v3990_v3 }
 0x62b   :  { %3993 = vmatpush3.bf16.msra.mxu0 %v3992_v42 }
 0x62c   :  { %3995 = vmatprep.subr.bf16.mxu0 %v3994_v55 }
 0x62f   :  { %3997 = vmatpush3.bf16.msra.mxu0 %v3996_v2 }
 0x630   :  { %3999 = vmatprep.subr.bf16.mxu0 %v3998_v9  ;;  %v2460_v9 = vld [vmem:[%s5376_s14] sm:$0x3] }
 0x633   :  { %4001 = vmatpush3.bf16.msra.mxu0 %v4000_v12  ;;  %v2671_v12 = vld [vmem:[%s5420_s3 + $0x108] sm:$0xff] }
 0x634   :  { %4003 = vmatprep.subr.bf16.mxu0 %v4002_v13  ;;  %v2688_v13 = vld [vmem:[%s5420_s3 + $0x190] sm:$0xff] }
 0x6e9   :  { %v2388_v0 = vpop.f32.mrb[64].mxu1  ;;  %v2441_v57 = vpop.f32.mrb[20].mxu0 }
 0x6ea   :  { %v2390_v21 = vpop.f32.mrb[65].mxu1  ;;  %v2443_v24 = vpop.f32.mrb[21].mxu0  ;;  %v2477_v29 = vmul.f32 %v2461_v15, %v2388_v0  ;;  %v2479_v32 = vmul.f32 %v2463_v51, %v2441_v57  ;;  %v2689_v15 = vld [vmem:[%s5420_s3 + $0x198] sm:$0xff]  ;;  %v4008_v51 = vpack.c.bf16 %v2671_v12, %v2670_v6  ;;  %v2672_v57 = vld [vmem:[%s5420_s3 + $0x110] sm:$0xff] }
 0x6eb   :  { %v2392_v28 = vpop.f32.mrb[66].mxu1  ;;  %v2445_v43 = vpop.f32.mrb[22].mxu0  ;;  %v2478_v31 = vmul.f32 %v2462_v53, %v2390_v21  ;;  %v2480_v38 = vmul.f32 %v2464_v25, %v2443_v24  ;;  %v4010_v0 = vpack.c.bf16 %v2689_v15, %v2688_v13  ;;  %v2673_v53 = vld [vmem:[%s5420_s3 + $0x118] sm:$0xff]  ;;  %v2674_v25 = vld [vmem:[%s5420_s3 + $0x120] sm:$0xff] }
 0x6ec   :  { %v2481_v4 = vmul.f32 %v2465_v23, %v2392_v28  ;;  %v2483_v48 = vmul.f32 %v2467_v14, %v2445_v43  ;;  %v2394_v35 = vpop.f32.mrb[67].mxu1  ;;  %v2447_v61 = vpop.f32.mrb[23].mxu0  ;;  %v2690_v23 = vld [vmem:[%s5420_s3 + $0x1a0] sm:$0xff]  ;;  %v2691_v14 = vld [vmem:[%s5420_s3 + $0x1a8] sm:$0xff]  ;;  %v4012_v21 = vpack.c.bf16 %v2673_v53, %v2672_v57  ;;  %v2693_v28 = vld [vmem:[%s5420_s3 + $0x1b8] sm:$0xff] }
 0x6ed   :  { %v2482_v39 = vmul.f32 %v2466_v37, %v2394_v35  ;;  %v2484_v59 = vmul.f32 %v2468_v36, %v2447_v61  ;;  %v4014_v24 = vpack.c.bf16 %v2691_v14, %v2690_v23  ;;  %v2675_v37 = vld [vmem:[%s5420_s3 + $0x128] sm:$0xff]  ;;  %v2692_v36 = vld [vmem:[%s5420_s3 + $0x1b0] sm:$0xff]  ;;  %v3378_v14 = vld [vmem:[%s5382_s18] ss:$0 sm:$0xff] }
 0x6ee   :  { %v3960_v11 = vpack.c.bf16 %v2481_v4, %v2477_v29  ;;  %v3968_v17 = vpack.c.bf16 %v2483_v48, %v2479_v32  ;;  %v4016_v43 = vpack.c.bf16 %v2675_v37, %v2674_v25  ;;  %v4018_v29 = vpack.c.bf16 %v2693_v28, %v2692_v36  ;;  %v2676_v32 = vld [vmem:[%s5420_s3 + $0x130] sm:$0xff]  ;;  %v2677_v4 = vld [vmem:[%s5420_s3 + $0x138] sm:$0xff]  ;;  %v2694_v48 = vld [vmem:[%s5420_s3 + $0x1c0] sm:$0xff] }
 0x6ef   :  { %v3958_v18 = vpack.c.bf16 %v2482_v39, %v2478_v31  ;;  %v3966_v41 = vpack.c.bf16 %v2484_v59, %v2480_v38  ;;  %v2695_v35 = vld [vmem:[%s5420_s3 + $0x1c8] sm:$0xff]  ;;  %v4020_v61 = vpack.c.bf16 %v2677_v4, %v2676_v32  ;;  %v2678_v38 = vld [vmem:[%s5420_s3 + $0x140] sm:$0xff]  ;;  %v2696_v59 = vld [vmem:[%s5420_s3 + $0x1d0] sm:$0xff] }
 0x6f0   :  { %v4022_v31 = vpack.c.bf16 %v2695_v35, %v2694_v48  ;;  %v2679_v39 = vld [vmem:[%s5420_s3 + $0x148] sm:$0xff]  ;;  %v4137_v36 = vld [vmem:[%s5379_s19] sm:$0xff]  }
 0x6f1   :  { %v2398_v22 = vpop.f32.mrb[68].mxu1  ;;  %v2451_v19 = vpop.f32.mrb[24].mxu0  ;;  %3959 = vmatprep.subr.bf16.mxu1 %v3958_v18 }
 0x6f2   :  { %v2400_v63 = vpop.f32.mrb[69].mxu1  ;;  %v2453_v7 = vpop.f32.mrb[25].mxu0  ;;  %3961 = vmatpush1.bf16.msra.mxu1 %v3960_v11  ;;  %v2485_v52 = vmul.f32 %v2469_v44, %v2398_v22  ;;  %v2487_v26 = vmul.f32 %v2471_v16, %v2451_v19  ;;  %v2697_v11 = vld [vmem:[%s5420_s3 + $0x1d8] sm:$0xff]  ;;  %v2652_v22 = vld [vmem:[%s5420_s3 + $0x70] sm:$0xff] }
 0x6f3   :  { %v2402_v27 = vpop.f32.mrb[70].mxu1  ;;  %v2455_v33 = vpop.f32.mrb[26].mxu0  ;;  %v2486_v62 = vmul.f32 %v2470_v45, %v2400_v63  ;;  %v2488_v42 = vmul.f32 %v2472_v30, %v2453_v7  ;;  %v4026_v18 = vpack.c.bf16 %v2697_v11, %v2696_v59  ;;  %v2681_v44 = vld [vmem:[%s5420_s3 + $0x158] sm:$0xff]  ;;  %v2682_v7 = vld [vmem:[%s5420_s3 + $0x160] sm:$0xff]  ;;  %v2683_v30 = vld [vmem:[%s5420_s3 + $0x168] sm:$0xff] }
 0x6f4   :  { %v2489_v3 = vmul.f32 %v2473_v20, %v2402_v27  ;;  %v2491_v56 = vmul.f32 %v2475_v46, %v2455_v33  ;;  %v2404_v47 = vpop.f32.mrb[71].mxu1  ;;  %v2457_v60 = vpop.f32.mrb[27].mxu0  ;;  %v2653_v19 = vld [vmem:[%s5420_s3 + $0x78] sm:$0xff]  ;;  %v2698_v20 = vld [vmem:[%s5420_s3 + $0x1e0] sm:$0xff]  ;;  %v2699_v46 = vld [vmem:[%s5420_s3 + $0x1e8] sm:$0xff] }
 0x6f5   :  { %v2490_v55 = vmul.f32 %v2474_v49, %v2404_v47  ;;  %v2492_v1 = vmul.f32 %v2476_v50, %v2457_v60  ;;  %v4004_v45 = vpack.c.bf16 %v2653_v19, %v2652_v22  ;;  %v4030_v63 = vpack.c.bf16 %v2699_v46, %v2698_v20  ;;  %v2700_v50 = vld [vmem:[%s5420_s3 + $0x1f0] sm:$0xff]  ;;  %v2701_v27 = vld [vmem:[%s5420_s3 + $0x1f8] sm:$0xff]  ;;  %v2849_v60 = vld [vmem:[%s5378_s1] sm:$0x3] }
 0x6f6   :  { %v3964_v40 = vpack.c.bf16 %v2489_v3, %v2485_v52  ;;  %v3972_v8 = vpack.c.bf16 %v2491_v56, %v2487_v26  ;;  %v4032_v49 = vpack.c.bf16 %v2683_v30, %v2682_v7  ;;  %v4034_v33 = vpack.c.bf16 %v2701_v27, %v2700_v50  ;;  %v2684_v52 = vld [vmem:[%s5420_s3 + $0x170] sm:$0xff]  ;;  %v2685_v26 = vld [vmem:[%s5420_s3 + $0x178] sm:$0xff]  ;;  %v2851_v56 = vld [vmem:[%s5377_s17] sm:$0xf] }
 0x6f7   :  { %v3962_v54 = vpack.c.bf16 %v2490_v55, %v2486_v62  ;;  %v3970_v2 = vpack.c.bf16 %v2492_v1, %v2488_v42  ;;  %4005 = vmatpush3.bf16.msra.mxu0 %v4004_v45  ;;  %v4036_v3 = vpack.c.bf16 %v2685_v26, %v2684_v52  ;;  %v2865_v42 = vsel %vm2863_vm3, %v2851_v56, 0  ;;  %v4141_v7 = vld [vmem:[%s5385_s23] sm:$0xff]   ;;  %v4142_v30 = vld [vmem:[%s5385_s23 + $0x8] sm:$0xff]  }
 0x6f8   :  { %3874 = vmatprep.subr.bf16.mxu0 %v4153_v34  ;;  %v2850_v55 = vpack.c.bf16 %v2849_v60, %v2849_v60  ;;  %v4144_v60 = vld [vmem:[%s5387_s25 + $0x8] sm:$0xff]  }
 0x6f9   :  { %3963 = vmatprep.subr.bf16.mxu1 %v3962_v54  ;;  %v4136_v54 = vld [vmem:[%s5379_s19 + $0x18] sm:$0xff]  }
 0x6fa   :  { %3965 = vmatpush1.bf16.msra.mxu1 %v3964_v40 }
 0x6fb   :  { %3967 = vmatprep.subr.bf16.mxu1 %v3966_v41  ;;  %v2680_v41 = vld [vmem:[%s5420_s3 + $0x150] sm:$0xff] }
 0x6fc   :  { %v4028_v16 = vpack.c.bf16 %v2681_v44, %v2680_v41 }
 0x6fd   :  { %3375 = vmatmul.mubr.msk.f32.vlgmr.msra.gmra.mrb[72].mxu1 %vm2232_vm2, %v2460_v9 }
 0x6fe   :  { %3969 = vmatpush1.bf16.msra.mxu1 %v3968_v17  ;;  %2631 = vmatprep.mubr.f32.mxu1 %v4153_v34  ;;  %v4024_v17 = vpack.c.bf16 %v2679_v39, %v2678_v38  ;;  %v4140_v38 = vld [vmem:[%s5383_s21 + $0x8] sm:$0xff]  }
 0x6ff   :  { %3971 = vmatprep.subr.bf16.mxu1 %v3970_v2  ;;  %v2916_v2 = vld [vmem:[%s5379_s19 + $0x20] sm:$0x3] }
 0x702   :  { %3973 = vmatpush1.bf16.msra.mxu1 %v3972_v8  ;;  %v4135_v8 = vld [vmem:[%s5379_s19 + $0x10] sm:$0xff]  }
 0x703   :  { %4007 = vmatprep.subr.bf16.mxu1 %v4006_v58 }
 0x705   :  { %3376 = vmatmul.mubr.msk.f32.vlgmr.msra.gmra.mrb[74].mxu1 %vm2232_vm2, %v2460_v9  ;;  %v3037_v9 = vsel %vm3035_vm6, %v2916_v2, 0 }
 0x706   :  { %4009 = vmatpush3.bf16.msra.mxu1 %v4008_v51 }
 0x707   :  { %4011 = vmatprep.subr.bf16.mxu1 %v4010_v0  ;;  %v3377_v0 = vld [vmem:[%s5381_s16] ss:$0 sm:$0xff] }
 0x70a   :  { %4013 = vmatpush3.bf16.msra.mxu1 %v4012_v21 }
 0x70b   :  { %4015 = vmatprep.subr.bf16.mxu1 %v4014_v24 }
 0x70e   :  { %4017 = vmatpush3.bf16.msra.mxu1 %v4016_v43 }
 0x70f   :  { %4019 = vmatprep.subr.bf16.mxu1 %v4018_v29  ;;  %v4138_v29 = vld [vmem:[%s5379_s19 + $0x8] sm:$0xff]  }
 0x712   :  { %4021 = vmatpush3.bf16.msra.mxu1 %v4020_v61 }
 0x713   :  { %4023 = vmatprep.subr.bf16.mxu1 %v4022_v31  ;;  %v4139_v31 = vld [vmem:[%s5383_s21] sm:$0xff]  }
 0x716   :  { %4025 = vmatpush3.bf16.msra.mxu1 %v4024_v17 }
 0x717   :  { %4027 = vmatprep.subr.bf16.mxu1 %v4026_v18 }
 0x71a   :  { %4029 = vmatpush3.bf16.msra.mxu1 %v4028_v16  ;;  %v3387_v16 = vld [vmem:[%s5384_s20] ss:$0 sm:$0xff] }
 0x71b   :  { %4031 = vmatprep.subr.bf16.mxu1 %v4030_v63 }
 0x71e   :  { %4033 = vmatpush3.bf16.msra.mxu1 %v4032_v49  ;;  %v3388_v49 = vld [vmem:[%s5386_s22] ss:$0 sm:$0xff] }
 0x71f   :  { %4035 = vmatprep.subr.bf16.mxu1 %v4034_v33 }
 0x722   :  { %4037 = vmatpush3.bf16.msra.mxu1 %v4036_v3 }
 0x723   :  { %3896 = vmatprep.subr.bf16.mxu1 %v4153_v34 }
 0x7d0   :  { %v2562_v47 = vpop.f32.mrb[72].mxu1 }
 0x7d1   :  { %v2564_v62 = vpop.f32.mrb[73].mxu1 }
 0x7d2   :  { %2773 = vmatprep.mubr.f32.mxu0 %v2564_v62  ;;  %v32_v62 = vstv %s5388_s26 }
 0x7d3   :  { %2774 = vmatmul.mubr.f32.vlgmr.msra.gmra.mrb[28].mxu0 %v2562_v47  ;;  %v4143_v47 = vld [vmem:[%s5387_s25] sm:$0xff]   ;;  %33 = vst [vmem:[#allocation2] sm:$0x1] %v32_v62 }
 0x7d4   :  { %3875 = vmatpush3.bf16.msra.mxu0 %v2865_v42  ;;  %3876 = vmatprep.mubr.msk.bf16.mxu0 %vm4154_vm4, %v4153_v34  ;;  %v3392_v42 = vld [vmem:[%s5389_s24] ss:$0 sm:$0xff] }
 0x7d5   :  { %3880 = vmatprep.subr.bf16.mxu0 %v4153_v34 }
 0x7d7   :  { %3877 = vmatmul.mubr.msk.bf16.vlgmr.msra.gmra.mrb[32].mxu0 %vm2859_vm5, %v2850_v55 }
 0x7d8   :  { %v2633_v1 = vpop.f32.mrb[74].mxu1  ;;  %3884 = vmatprep.mubr.msk.bf16.mxu0 %vm4154_vm4, %v4153_v34  ;;  %3881 = vmatpush3.bf16.msra.mxu0 %v4135_v8 }
 0x7d9   :  { %v2635_v40 = vpop.f32.mrb[75].mxu1  ;;  %3882 = vmatprep.subr.bf16.mxu0 %v4153_v34 }
 0x7da   :  { %2843 = vmatprep.mubr.f32.mxu1 %v2635_v40  ;;  %v3396_v10 = vld [vmem:[#allocation2] ss:$0 sm:$0xff] }
 0x7db   :  { %2844 = vmatmul.mubr.f32.vlgmr.msra.gmra.mrb[76].mxu1 %v2633_v1 }
 0x7dc   :  { %3898 = vmatprep.mubr.msk.bf16.mxu1 %vm4154_vm4, %v4153_v34  ;;  %3883 = vmatpush3.bf16.msra.mxu0 %v4136_v54 }
 0x7dd   :  { %3888 = vmatprep.subr.bf16.mxu0 %v4153_v34  ;;  %3897 = vmatpush3.bf16.msra.mxu1 %v3037_v9 }
 0x7de   :  { %3902 = vmatprep.subr.bf16.mxu1 %v4153_v34 }
 0x7e0   :  { %3899 = vmatmul.mubr.msk.bf16.vlgmr.msra.gmra.mrb[80].mxu1 %vm3031_vm7, %v3030_v5 }
 0x7e1   :  { %3906 = vmatprep.mubr.msk.bf16.mxu1 %vm4154_vm4, %v4153_v34  ;;  %3903 = vmatpush3.bf16.msra.mxu1 %v4139_v31 }
 0x7e2   :  { %3904 = vmatprep.subr.bf16.mxu1 %v4153_v34 }
 0x7e5   :  { %3905 = vmatpush3.bf16.msra.mxu1 %v4140_v38 }
 0x7e6   :  { %3918 = vmatprep.subr.bf16.mxu1 %v4153_v34 }
 0x8a6   :  { %v3571_v58 = vpop.f32.mrb[28].mxu0 }
 0x8a7   :  { %v3572_v6 = vpop.f32.mrb[29].mxu0 }
 0x8a8   :  { %v3573_v12 = vadd.f32 %v3572_v6, %v3571_v58 }
 0x8aa   :  { %v2901_v13 = vpop.f32.mrb[32].mxu0  ;;  %v2776_v21 = vadd.f32 %v3573_v12, %v3377_v0 }
 0x8ab   :  { %v3878_v15 = vpop.f32.mrb[33].mxu0  ;;  %v2902_v37 = vadd.f32 %v3378_v14, %v2901_v13 }
 0x8ac   :  { %v2904_v51 = vpop.f32.mrb[34].mxu0 }
 0x8ad   :  { %v3879_v57 = vpop.f32.mrb[35].mxu0  ;;  %v2907_v43 = vmax.f32 %v2902_v37, 0.0 }
 0x8ae   :  { %v3606_v53 = vpop.f32.mrb[76].mxu1 }
 0x8af   :  { %v3607_v23 = vpop.f32.mrb[77].mxu1  ;;  %v2917_v32 = vpack.c.bf16 %v2907_v43, %v2907_v43 }
 0x8b0   :  { %v3608_v24 = vadd.f32 %v3607_v23, %v3606_v53 }
 0x8b2   :  { %v2846_v25 = vadd.f32 %v3608_v24, %v2776_v21 }
 0x8b3   :  { %v3073_v4 = vpop.f32.mrb[80].mxu1 }
 0x8b4   :  { %v2918_v28 = vpack.c.bf16 %v2846_v25, %v2846_v25  ;;  %v3900_v48 = vpop.f32.mrb[81].mxu1 }
 0x8b5   :  { %v3076_v35 = vpop.f32.mrb[82].mxu1 }
 0x8b6   :  { %3885 = vmatmul.mubr.msk.bf16.vlgmr.msra.gmra.mrb[36].mxu0 %vm2232_vm2, %v2918_v28  ;;  %v3901_v61 = vpop.f32.mrb[83].mxu1 }
 0x8b7   :  { %3889 = vmatpush3.bf16.msra.mxu0 %v4137_v36  ;;  %3892 = vmatprep.mubr.msk.bf16.mxu0 %vm4154_vm4, %v4153_v34 }
 0x8b8   :  { %3890 = vmatprep.subr.bf16.mxu0 %v4153_v34 }
 0x8bb   :  { %3891 = vmatpush3.bf16.msra.mxu0 %v4138_v29 }
 0x8bc   :  { %3910 = vmatprep.subr.bf16.mxu0 %v4153_v34 }
 0x8be   :  { %3893 = vmatmul.mubr.msk.bf16.vlgmr.msra.gmra.mrb[40].mxu0 %vm2232_vm2, %v2917_v32 }
 0x8bf   :  { %3914 = vmatprep.mubr.msk.bf16.mxu0 %vm4154_vm4, %v4153_v34  ;;  %3911 = vmatpush3.bf16.msra.mxu0 %v4141_v7 }
 0x8c0   :  { %3912 = vmatprep.subr.bf16.mxu0 %v4153_v34 }
 0x8c3   :  { %3913 = vmatpush3.bf16.msra.mxu0 %v4142_v30 }
 0x989   :  { %v2968_v39 = vpop.f32.mrb[36].mxu0 }
 0x98a   :  { %v3886_v59 = vpop.f32.mrb[37].mxu0 }
 0x98b   :  { %v2971_v11 = vpop.f32.mrb[38].mxu0 }
 0x98c   :  { %v3887_v17 = vpop.f32.mrb[39].mxu0 }
 0x991   :  { %v3023_v18 = vpop.f32.mrb[40].mxu0 }
 0x992   :  { %v3024_v41 = vadd.f32 %v3023_v18, %v2968_v39  ;;  %v3894_v44 = vpop.f32.mrb[41].mxu0 }
 0x993   :  { %v3026_v22 = vpop.f32.mrb[42].mxu0 }
 0x994   :  { %v3079_v19 = vadd.f32 %v3073_v4, %v3024_v41  ;;  %v3895_v45 = vpop.f32.mrb[43].mxu0 }
 0x996   :  { %v3087_v20 = vadd.f32 %v3387_v16, %v3079_v19 }
 0x998   :  { %v3088_v46 = vmax.f32 %v3087_v20, 0.0 }
 0x99a   :  { %v3089_v63 = vpack.c.bf16 %v3088_v46, %v3088_v46 }
 0x99c   :  { %3907 = vmatmul.mubr.msk.bf16.vlgmr.msra.gmra.mrb[84].mxu1 %vm2232_vm2, %v3089_v63 }
 0x99d   :  { %3922 = vmatprep.mubr.msk.bf16.mxu1 %vm4154_vm4, %v4153_v34  ;;  %3919 = vmatpush3.bf16.msra.mxu1 %v4143_v47 }
 0x99e   :  { %3920 = vmatprep.subr.bf16.mxu1 %v4153_v34 }
 0x9a1   :  { %3921 = vmatpush3.bf16.msra.mxu1 %v4144_v60 }
 0xa6f   :  { %v3150_v50 = vpop.f32.mrb[84].mxu1 }
 0xa70   :  { %v3151_v27 = vadd.f32 %v3388_v49, %v3150_v50  ;;  %v3908_v33 = vpop.f32.mrb[85].mxu1 }
 0xa71   :  { %v3153_v52 = vpop.f32.mrb[86].mxu1 }
 0xa72   :  { %v3156_v26 = vmax.f32 %v3151_v27, 0.0  ;;  %v3909_v3 = vpop.f32.mrb[87].mxu1 }
 0xa74   :  { %v3157_v56 = vpack.c.bf16 %v3156_v26, %v3156_v26 }
 0xa76   :  { %3915 = vmatmul.mubr.msk.bf16.vlgmr.msra.gmra.mrb[44].mxu0 %vm2232_vm2, %v3157_v56 }
 0xb49   :  { %v3218_v55 = vpop.f32.mrb[44].mxu0 }
 0xb4a   :  { %v3219_v1 = vadd.f32 %v3392_v42, %v3218_v55  ;;  %v3916_v40 = vpop.f32.mrb[45].mxu0 }
 0xb4b   :  { %v3221_v8 = vpop.f32.mrb[46].mxu0 }
 0xb4c   :  { %v3224_v54 = vmax.f32 %v3219_v1, 0.0  ;;  %v3917_v2 = vpop.f32.mrb[47].mxu0 }
 0xb4e   :  { %v3225_v9 = vpack.c.bf16 %v3224_v54, %v3224_v54 }
 0xb50   :  { %3923 = vmatmul.mubr.msk.bf16.vlgmr.msra.gmra.mrb[88].mxu1 %vm2232_vm2, %v3225_v9 }
 0xc23   :  { %v3286_v5 = vpop.f32.mrb[88].mxu1 }
 0xc24   :  { %v3287_v58 = vadd.f32 %v3396_v10, %v3286_v5  ;;  %v3924_v34 = vpop.f32.mrb[89].mxu1 }
 0xc25   :  { %v3289_v6 = vpop.f32.mrb[90].mxu1 }
 0xc26   :  { %3293 = vst.msk [vmem:[%s5390_s27] sm:$0x3] %vm3292_vm8, %v3287_v58  ;;  %v3925_v12 = vpop.f32.mrb[91].mxu1 }

</bundles_post_ra>
